<compile_context>
chip_gen: v5e
topology: v5e:2x2
jax: 0.10.0
libtpu: 0.0.40
codegen_flags: <defaults>
</compile_context>

<pallas_src>
import functools
import math

import jax
import jax.numpy as jnp
from jax.experimental import pallas as pl
from jax.experimental.pallas import tpu as pltpu


def _round_up(x, m):
    return ((x + m - 1) // m) * m


# ---------------------------------------------------------------------------
# One-time weight packing (init-time, NOT per forward call).
#   Per-direction nn.GRU weights, stored transposed (in_features, out_features),
#   PyTorch gate order (r, z, n) stacked along the output axis.
# Packed layout (L = 128 for H <= 64):
#   wif/wib : (D, 3L)   gate g of direction d at lanes [g*L + d*H : g*L + d*H + H]
#   bpf/bpb : (1, 3L)   input-side biases; r/z also get the hidden-side bias folded in
#   wh      : (L, 3L)   block-diagonal hidden->gate weights (rows d*H:(d+1)*H)
#   bhn     : (1, L)    hidden-side n-gate biases (must stay inside r * (Whn h + bhn))
# ---------------------------------------------------------------------------
def pack_encoder_params(params):
    H = params["w_hh_f"].shape[0]
    D = params["w_ih_f"].shape[0]
    L = _round_up(2 * H, 128)

    def input_block(w_ih, b_ih, b_hh, off):
        wi = jnp.zeros((D, 3 * L), jnp.float32)
        bp = jnp.zeros((1, 3 * L), jnp.float32)
        for g in range(3):
            wi = wi.at[:, g * L + off: g * L + off + H].set(w_ih[:, g * H:(g + 1) * H])
            bias = b_ih[g * H:(g + 1) * H]
            if g < 2:  # r, z: fold input- and hidden-side biases together
                bias = bias + b_hh[g * H:(g + 1) * H]
            bp = bp.at[0, g * L + off: g * L + off + H].set(bias)
        return wi, bp

    def hidden_block(w_hh, off):
        wh = jnp.zeros((L, 3 * L), jnp.float32)
        for g in range(3):
            wh = wh.at[off:off + H, g * L + off: g * L + off + H].set(
                w_hh[:, g * H:(g + 1) * H])
        return wh

    wif, bpf = input_block(params["w_ih_f"], params["b_ih_f"], params["b_hh_f"], 0)
    wib, bpb = input_block(params["w_ih_b"], params["b_ih_b"], params["b_hh_b"], H)
    wh = hidden_block(params["w_hh_f"], 0) + hidden_block(params["w_hh_b"], H)
    bhn = jnp.zeros((1, L), jnp.float32)
    bhn = bhn.at[0, 0:H].set(params["b_hh_f"][2 * H:3 * H])
    bhn = bhn.at[0, H:2 * H].set(params["b_hh_b"][2 * H:3 * H])
    return {"wif": wif, "wib": wib, "bpf": bpf, "bpb": bpb, "wh": wh, "bhn": bhn}


# ---------------------------------------------------------------------------
# Kernel: bidirectional GRU, both directions interleaved in one recurrence.
#   x    : (T*B_pad, D)   batch-padded, time-major flattened src
#   h0   : (B_pad, L)     [h_fwd | h_bwd | zeros] lane layout
#   wif  : (D, 3L), wib : (D, 3L), bpf/bpb : (1, 3L), wh : (L, 3L), bhn : (1, L)
# Outputs (lane-dense, wrapper slices back to real B/H):
#   out  : (T, B_pad, L)  lanes 0:H = h_fwd(t) + h_bwd(t)
#   hid  : (2, B_pad, L)  lanes 0:H = [h_fwd final, h_bwd final]
# ---------------------------------------------------------------------------
def _bigru_encoder_kernel(x_ref, h0_ref, wif_ref, wib_ref, bpf_ref, bpb_ref,
                          wh_ref, bhn_ref, out_ref, hid_ref, *, hidden_size):
    T, B, L = out_ref.shape
    H = hidden_size

    # Hoisted input-side gate projections for both directions and all T steps —
    # two small matmuls entirely off the serial recurrence chain.
    x = x_ref[...]
    gi_f = jnp.dot(x, wif_ref[...], preferred_element_type=jnp.float32) + bpf_ref[...]
    gi_b = jnp.dot(x, wib_ref[...], preferred_element_type=jnp.float32) + bpb_ref[...]

    # Per-step combined gates: fwd gates for time s, bwd gates for time T-1-s.
    # 8-sublane-aligned static slices (B == B_pad == multiple of 8) + one VPU add,
    # all independent of the recurrence.
    gi = [gi_f[s * B:(s + 1) * B, :] + gi_b[(T - 1 - s) * B:(T - s) * B, :]
          for s in range(T)]

    bhn = jnp.broadcast_to(bhn_ref[...], (B, L))    # hoisted broadcast (no per-iter bcast)

    h = h0_ref[...]                                 # (B_pad, L): fwd at lanes 0:H, bwd H:2H
    states = []
    for s in range(T):                              # statically unrolled recurrence (T=8)
        gh = jnp.dot(h, wh_ref[...], preferred_element_type=jnp.float32)  # (B, 3L)
        gi_s = gi[s]
        # All gate groups lane-aligned at offset 0 of their own 128-lane block: the whole
        # gate math is full-vreg VPU/EUP work with no cross-lane movement.
        r = jax.nn.sigmoid(gi_s[:, 0:L] + gh[:, 0:L])
        z = jax.nn.sigmoid(gi_s[:, L:2 * L] + gh[:, L:2 * L])
        n = jnp.tanh(gi_s[:, 2 * L:3 * L] + r * (gh[:, 2 * L:3 * L] + bhn))
        h = (1.0 - z) * n + z * h
        states.append(h)

    # Epilogue: out[t] = h_fwd(t) + h_bwd(t). The bwd state for time t was produced at
    # interleaved step T-1-t (lanes H:2H); roll it down to lanes 0:H and store the full
    # 128-lane vreg unmasked (lane-dense store); lanes >= H are don't-care, sliced off
    # in the wrapper.
    for t in range(T):
        out_ref[t] = states[t] + jnp.roll(states[T - 1 - t], -H, axis=1)
    hid_ref[0] = states[T - 1]                              # forward final (time T-1)
    hid_ref[1] = jnp.roll(states[T - 1], -H, axis=1)        # backward final (time 0)


# ---------------------------------------------------------------------------
# Wrapper == Encoder.forward(src, hidden=None). `packed` comes from
# pack_encoder_params (call once at init, not per forward).
# ---------------------------------------------------------------------------
def mctn_encoder(src, packed, hidden=None, *, hidden_size):
    T, B, D = src.shape
    H = hidden_size
    L = packed["wh"].shape[0]
    B_pad = _round_up(B, 8)

    # Batch-pad to the native 8-sublane tile and flatten time-major.
    x = jnp.pad(src, ((0, 0), (0, B_pad - B), (0, 0))).reshape(T * B_pad, D)

    if hidden is None:
        h0 = jnp.zeros((B_pad, L), jnp.float32)
    else:
        h0 = jnp.zeros((B_pad, L), jnp.float32)
        h0 = h0.at[:B, 0:H].set(hidden[0])
        h0 = h0.at[:B, H:2 * H].set(hidden[1])

    vmem = pl.BlockSpec(memory_space=pltpu.MemorySpace.VMEM)
    out_pad, hid_pad = pl.pallas_call(
        functools.partial(_bigru_encoder_kernel, hidden_size=H),
        out_shape=(jax.ShapeDtypeStruct((T, B_pad, L), jnp.float32),
                   jax.ShapeDtypeStruct((2, B_pad, L), jnp.float32)),
        in_specs=[vmem] * 8,
        out_specs=(vmem, vmem),
    )(x, h0, packed["wif"], packed["wib"], packed["bpf"], packed["bpb"],
      packed["wh"], packed["bhn"])
    return out_pad[:, :B, :H], hid_pad[:, :B, :H]


# ---------------------------------------------------------------------------
# Pure-JAX reference (PyTorch nn.GRU semantics) for correctness checking.
# ---------------------------------------------------------------------------
def _gru_cell_ref(x, h, w_ih, w_hh, b_ih, b_hh):
    H = h.shape[-1]
    hp = jax.lax.Precision.HIGHEST
    gi = jnp.dot(x, w_ih, precision=hp) + b_ih
    gh = jnp.dot(h, w_hh, precision=hp) + b_hh
    r = jax.nn.sigmoid(gi[:, 0:H] + gh[:, 0:H])
    z = jax.nn.sigmoid(gi[:, H:2 * H] + gh[:, H:2 * H])
    n = jnp.tanh(gi[:, 2 * H:] + r * gh[:, 2 * H:])
    return (1.0 - z) * n + z * h


def encoder_ref(src, params):
    T, B, _ = src.shape
    H = params["w_hh_f"].shape[0]
    h_f = jnp.zeros((B, H), jnp.float32)
    h_b = jnp.zeros((B, H), jnp.float32)
    fwd, bwd = [], [None] * T
    for t in range(T):
        h_f = _gru_cell_ref(src[t], h_f, params["w_ih_f"], params["w_hh_f"],
                            params["b_ih_f"], params["b_hh_f"])
        fwd.append(h_f)
    for t in range(T - 1, -1, -1):
        h_b = _gru_cell_ref(src[t], h_b, params["w_ih_b"], params["w_hh_b"],
                            params["b_ih_b"], params["b_hh_b"])
        bwd[t] = h_b
    outputs = jnp.stack([fwd[t] + bwd[t] for t in range(T)], axis=0)
    hidden = jnp.stack([fwd[-1], bwd[0]], axis=0)
    return outputs, hidden


if __name__ == "__main__":
    T, B, D, H = 8, 2, 16, 32            # seq len, batch, input dim, GRU hidden

    key = jax.random.PRNGKey(0)
    k_src, k_par = jax.random.split(key)
    src = jax.random.normal(k_src, (T, B, D), jnp.float32)

    s = 1.0 / math.sqrt(H)               # PyTorch nn.GRU init scale
    ks = jax.random.split(k_par, 8)
    u = lambda k, shape: jax.random.uniform(k, shape, jnp.float32, minval=-s, maxval=s)
    params = {
        "w_ih_f": u(ks[0], (D, 3 * H)), "w_hh_f": u(ks[1], (H, 3 * H)),
        "b_ih_f": u(ks[2], (3 * H,)),   "b_hh_f": u(ks[3], (3 * H,)),
        "w_ih_b": u(ks[4], (D, 3 * H)), "w_hh_b": u(ks[5], (H, 3 * H)),
        "b_ih_b": u(ks[6], (3 * H,)),   "b_hh_b": u(ks[7], (3 * H,)),
    }

    # Init-time packing (hoisted out of the per-call path).
    packed = pack_encoder_params(params)
    packed = jax.tree_util.tree_map(jax.block_until_ready, packed)

    run = jax.jit(functools.partial(mctn_encoder, hidden_size=H))
    out, hid = run(src, packed)
    jax.block_until_ready((out, hid))

    assert out.shape == (T, B, H)
    assert hid.shape == (2, B, H)

    ref_out, ref_hid = encoder_ref(src, params)
    assert jnp.allclose(out, ref_out, atol=2e-2, rtol=2e-2)
    assert jnp.allclose(hid, ref_hid, atol=2e-2, rtol=2e-2)
    print("KERNEL_OK")
</pallas_src>

<mosaic_0001>
module attributes {stable_mosaic.version = 11 : i64} {
  func.func @_bigru_encoder_kernel(%arg0: memref<64x16xf32, #tpu.memory_space<vmem>>, %arg1: memref<8x128xf32, #tpu.memory_space<vmem>>, %arg2: memref<16x384xf32, #tpu.memory_space<vmem>>, %arg3: memref<16x384xf32, #tpu.memory_space<vmem>>, %arg4: memref<1x384xf32, #tpu.memory_space<vmem>>, %arg5: memref<1x384xf32, #tpu.memory_space<vmem>>, %arg6: memref<128x384xf32, #tpu.memory_space<vmem>>, %arg7: memref<1x128xf32, #tpu.memory_space<vmem>>, %arg8: memref<8x8x128xf32, #tpu.memory_space<vmem>>, %arg9: memref<2x8x128xf32, #tpu.memory_space<vmem>>) attributes {dimension_semantics = [], scalar_prefetch = 0 : i64, scratch_operands = 0 : i64, tpu.core_type = #tpu.core_type<tc>} {
    %c0 = arith.constant 0 : index
    %c0_0 = arith.constant 0 : index
    %0 = vector.load %arg0[%c0, %c0_0] : memref<64x16xf32, #tpu.memory_space<vmem>>, vector<64x16xf32>
    %c0_1 = arith.constant 0 : index
    %c0_2 = arith.constant 0 : index
    %1 = vector.load %arg2[%c0_1, %c0_2] : memref<16x384xf32, #tpu.memory_space<vmem>>, vector<16x384xf32>
    %cst = arith.constant dense<0.000000e+00> : vector<64x384xf32>
    %2 = tpu.matmul %0, %1, %cst {dimension_numbers = #tpu.dot_dimension_numbers<[1], [0], [0], [1], [0, 0, 1, 1], [], []>} : vector<64x16xf32>, vector<16x384xf32>, vector<64x384xf32> -> vector<64x384xf32>
    %c0_3 = arith.constant 0 : index
    %c0_4 = arith.constant 0 : index
    %3 = vector.load %arg4[%c0_3, %c0_4] : memref<1x384xf32, #tpu.memory_space<vmem>>, vector<1x384xf32>
    %4 = vector.broadcast %3 : vector<1x384xf32> to vector<64x384xf32>
    %5 = arith.addf %2, %4 : vector<64x384xf32>
    %c0_5 = arith.constant 0 : index
    %c0_6 = arith.constant 0 : index
    %6 = vector.load %arg3[%c0_5, %c0_6] : memref<16x384xf32, #tpu.memory_space<vmem>>, vector<16x384xf32>
    %cst_7 = arith.constant dense<0.000000e+00> : vector<64x384xf32>
    %7 = tpu.matmul %0, %6, %cst_7 {dimension_numbers = #tpu.dot_dimension_numbers<[1], [0], [0], [1], [0, 0, 1, 1], [], []>} : vector<64x16xf32>, vector<16x384xf32>, vector<64x384xf32> -> vector<64x384xf32>
    %c0_8 = arith.constant 0 : index
    %c0_9 = arith.constant 0 : index
    %8 = vector.load %arg5[%c0_8, %c0_9] : memref<1x384xf32, #tpu.memory_space<vmem>>, vector<1x384xf32>
    %9 = vector.broadcast %8 : vector<1x384xf32> to vector<64x384xf32>
    %10 = arith.addf %7, %9 : vector<64x384xf32>
    %11 = vector.extract_strided_slice %5 {offsets = [0, 0], sizes = [8, 384], strides = [1, 1]} : vector<64x384xf32> to vector<8x384xf32>
    %12 = vector.extract_strided_slice %10 {offsets = [56, 0], sizes = [8, 384], strides = [1, 1]} : vector<64x384xf32> to vector<8x384xf32>
    %13 = arith.addf %11, %12 : vector<8x384xf32>
    %14 = vector.extract_strided_slice %5 {offsets = [8, 0], sizes = [8, 384], strides = [1, 1]} : vector<64x384xf32> to vector<8x384xf32>
    %15 = vector.extract_strided_slice %10 {offsets = [48, 0], sizes = [8, 384], strides = [1, 1]} : vector<64x384xf32> to vector<8x384xf32>
    %16 = arith.addf %14, %15 : vector<8x384xf32>
    %17 = vector.extract_strided_slice %5 {offsets = [16, 0], sizes = [8, 384], strides = [1, 1]} : vector<64x384xf32> to vector<8x384xf32>
    %18 = vector.extract_strided_slice %10 {offsets = [40, 0], sizes = [8, 384], strides = [1, 1]} : vector<64x384xf32> to vector<8x384xf32>
    %19 = arith.addf %17, %18 : vector<8x384xf32>
    %20 = vector.extract_strided_slice %5 {offsets = [24, 0], sizes = [8, 384], strides = [1, 1]} : vector<64x384xf32> to vector<8x384xf32>
    %21 = vector.extract_strided_slice %10 {offsets = [32, 0], sizes = [8, 384], strides = [1, 1]} : vector<64x384xf32> to vector<8x384xf32>
    %22 = arith.addf %20, %21 : vector<8x384xf32>
    %23 = vector.extract_strided_slice %5 {offsets = [32, 0], sizes = [8, 384], strides = [1, 1]} : vector<64x384xf32> to vector<8x384xf32>
    %24 = vector.extract_strided_slice %10 {offsets = [24, 0], sizes = [8, 384], strides = [1, 1]} : vector<64x384xf32> to vector<8x384xf32>
    %25 = arith.addf %23, %24 : vector<8x384xf32>
    %26 = vector.extract_strided_slice %5 {offsets = [40, 0], sizes = [8, 384], strides = [1, 1]} : vector<64x384xf32> to vector<8x384xf32>
    %27 = vector.extract_strided_slice %10 {offsets = [16, 0], sizes = [8, 384], strides = [1, 1]} : vector<64x384xf32> to vector<8x384xf32>
    %28 = arith.addf %26, %27 : vector<8x384xf32>
    %29 = vector.extract_strided_slice %5 {offsets = [48, 0], sizes = [8, 384], strides = [1, 1]} : vector<64x384xf32> to vector<8x384xf32>
    %30 = vector.extract_strided_slice %10 {offsets = [8, 0], sizes = [8, 384], strides = [1, 1]} : vector<64x384xf32> to vector<8x384xf32>
    %31 = arith.addf %29, %30 : vector<8x384xf32>
    %32 = vector.extract_strided_slice %5 {offsets = [56, 0], sizes = [8, 384], strides = [1, 1]} : vector<64x384xf32> to vector<8x384xf32>
    %33 = vector.extract_strided_slice %10 {offsets = [0, 0], sizes = [8, 384], strides = [1, 1]} : vector<64x384xf32> to vector<8x384xf32>
    %34 = arith.addf %32, %33 : vector<8x384xf32>
    %c0_10 = arith.constant 0 : index
    %c0_11 = arith.constant 0 : index
    %35 = vector.load %arg7[%c0_10, %c0_11] : memref<1x128xf32, #tpu.memory_space<vmem>>, vector<1x128xf32>
    %36 = vector.shape_cast %35 : vector<1x128xf32> to vector<1x128xf32>
    %37 = vector.broadcast %36 : vector<1x128xf32> to vector<8x128xf32>
    %c0_12 = arith.constant 0 : index
    %c0_13 = arith.constant 0 : index
    %38 = vector.load %arg1[%c0_12, %c0_13] : memref<8x128xf32, #tpu.memory_space<vmem>>, vector<8x128xf32>
    %c0_14 = arith.constant 0 : index
    %c0_15 = arith.constant 0 : index
    %39 = vector.load %arg6[%c0_14, %c0_15] : memref<128x384xf32, #tpu.memory_space<vmem>>, vector<128x384xf32>
    %cst_16 = arith.constant dense<0.000000e+00> : vector<8x384xf32>
    %40 = tpu.matmul %38, %39, %cst_16 {dimension_numbers = #tpu.dot_dimension_numbers<[1], [0], [0], [1], [0, 0, 1, 1], [], []>} : vector<8x128xf32>, vector<128x384xf32>, vector<8x384xf32> -> vector<8x384xf32>
    %41 = vector.extract_strided_slice %13 {offsets = [0, 0], sizes = [8, 128], strides = [1, 1]} : vector<8x384xf32> to vector<8x128xf32>
    %42 = vector.extract_strided_slice %40 {offsets = [0, 0], sizes = [8, 128], strides = [1, 1]} : vector<8x384xf32> to vector<8x128xf32>
    %43 = arith.addf %41, %42 : vector<8x128xf32>
    %44 = arith.negf %43 : vector<8x128xf32>
    %45 = math.exp %44 : vector<8x128xf32>
    %cst_17 = arith.constant 1.000000e+00 : f32
    %46 = vector.broadcast %cst_17 : f32 to vector<8x128xf32>
    %47 = arith.addf %46, %45 : vector<8x128xf32>
    %48 = arith.divf %46, %47 : vector<8x128xf32>
    %49 = vector.extract_strided_slice %13 {offsets = [0, 128], sizes = [8, 128], strides = [1, 1]} : vector<8x384xf32> to vector<8x128xf32>
    %50 = vector.extract_strided_slice %40 {offsets = [0, 128], sizes = [8, 128], strides = [1, 1]} : vector<8x384xf32> to vector<8x128xf32>
    %51 = arith.addf %49, %50 : vector<8x128xf32>
    %52 = arith.negf %51 : vector<8x128xf32>
    %53 = math.exp %52 : vector<8x128xf32>
    %cst_18 = arith.constant 1.000000e+00 : f32
    %54 = vector.broadcast %cst_18 : f32 to vector<8x128xf32>
    %55 = arith.addf %54, %53 : vector<8x128xf32>
    %56 = arith.divf %54, %55 : vector<8x128xf32>
    %57 = vector.extract_strided_slice %13 {offsets = [0, 256], sizes = [8, 128], strides = [1, 1]} : vector<8x384xf32> to vector<8x128xf32>
    %58 = vector.extract_strided_slice %40 {offsets = [0, 256], sizes = [8, 128], strides = [1, 1]} : vector<8x384xf32> to vector<8x128xf32>
    %59 = arith.addf %58, %37 : vector<8x128xf32>
    %60 = arith.mulf %48, %59 : vector<8x128xf32>
    %61 = arith.addf %57, %60 : vector<8x128xf32>
    %62 = math.tanh %61 : vector<8x128xf32>
    %cst_19 = arith.constant 1.000000e+00 : f32
    %63 = vector.broadcast %cst_19 : f32 to vector<8x128xf32>
    %64 = arith.subf %63, %56 : vector<8x128xf32>
    %65 = arith.mulf %64, %62 : vector<8x128xf32>
    %66 = arith.mulf %56, %38 : vector<8x128xf32>
    %67 = arith.addf %65, %66 : vector<8x128xf32>
    %c0_20 = arith.constant 0 : index
    %c0_21 = arith.constant 0 : index
    %68 = vector.load %arg6[%c0_20, %c0_21] : memref<128x384xf32, #tpu.memory_space<vmem>>, vector<128x384xf32>
    %cst_22 = arith.constant dense<0.000000e+00> : vector<8x384xf32>
    %69 = tpu.matmul %67, %68, %cst_22 {dimension_numbers = #tpu.dot_dimension_numbers<[1], [0], [0], [1], [0, 0, 1, 1], [], []>} : vector<8x128xf32>, vector<128x384xf32>, vector<8x384xf32> -> vector<8x384xf32>
    %70 = vector.extract_strided_slice %16 {offsets = [0, 0], sizes = [8, 128], strides = [1, 1]} : vector<8x384xf32> to vector<8x128xf32>
    %71 = vector.extract_strided_slice %69 {offsets = [0, 0], sizes = [8, 128], strides = [1, 1]} : vector<8x384xf32> to vector<8x128xf32>
    %72 = arith.addf %70, %71 : vector<8x128xf32>
    %73 = arith.negf %72 : vector<8x128xf32>
    %74 = math.exp %73 : vector<8x128xf32>
    %cst_23 = arith.constant 1.000000e+00 : f32
    %75 = vector.broadcast %cst_23 : f32 to vector<8x128xf32>
    %76 = arith.addf %75, %74 : vector<8x128xf32>
    %77 = arith.divf %75, %76 : vector<8x128xf32>
    %78 = vector.extract_strided_slice %16 {offsets = [0, 128], sizes = [8, 128], strides = [1, 1]} : vector<8x384xf32> to vector<8x128xf32>
    %79 = vector.extract_strided_slice %69 {offsets = [0, 128], sizes = [8, 128], strides = [1, 1]} : vector<8x384xf32> to vector<8x128xf32>
    %80 = arith.addf %78, %79 : vector<8x128xf32>
    %81 = arith.negf %80 : vector<8x128xf32>
    %82 = math.exp %81 : vector<8x128xf32>
    %cst_24 = arith.constant 1.000000e+00 : f32
    %83 = vector.broadcast %cst_24 : f32 to vector<8x128xf32>
    %84 = arith.addf %83, %82 : vector<8x128xf32>
    %85 = arith.divf %83, %84 : vector<8x128xf32>
    %86 = vector.extract_strided_slice %16 {offsets = [0, 256], sizes = [8, 128], strides = [1, 1]} : vector<8x384xf32> to vector<8x128xf32>
    %87 = vector.extract_strided_slice %69 {offsets = [0, 256], sizes = [8, 128], strides = [1, 1]} : vector<8x384xf32> to vector<8x128xf32>
    %88 = arith.addf %87, %37 : vector<8x128xf32>
    %89 = arith.mulf %77, %88 : vector<8x128xf32>
    %90 = arith.addf %86, %89 : vector<8x128xf32>
    %91 = math.tanh %90 : vector<8x128xf32>
    %cst_25 = arith.constant 1.000000e+00 : f32
    %92 = vector.broadcast %cst_25 : f32 to vector<8x128xf32>
    %93 = arith.subf %92, %85 : vector<8x128xf32>
    %94 = arith.mulf %93, %91 : vector<8x128xf32>
    %95 = arith.mulf %85, %67 : vector<8x128xf32>
    %96 = arith.addf %94, %95 : vector<8x128xf32>
    %c0_26 = arith.constant 0 : index
    %c0_27 = arith.constant 0 : index
    %97 = vector.load %arg6[%c0_26, %c0_27] : memref<128x384xf32, #tpu.memory_space<vmem>>, vector<128x384xf32>
    %cst_28 = arith.constant dense<0.000000e+00> : vector<8x384xf32>
    %98 = tpu.matmul %96, %97, %cst_28 {dimension_numbers = #tpu.dot_dimension_numbers<[1], [0], [0], [1], [0, 0, 1, 1], [], []>} : vector<8x128xf32>, vector<128x384xf32>, vector<8x384xf32> -> vector<8x384xf32>
    %99 = vector.extract_strided_slice %19 {offsets = [0, 0], sizes = [8, 128], strides = [1, 1]} : vector<8x384xf32> to vector<8x128xf32>
    %100 = vector.extract_strided_slice %98 {offsets = [0, 0], sizes = [8, 128], strides = [1, 1]} : vector<8x384xf32> to vector<8x128xf32>
    %101 = arith.addf %99, %100 : vector<8x128xf32>
    %102 = arith.negf %101 : vector<8x128xf32>
    %103 = math.exp %102 : vector<8x128xf32>
    %cst_29 = arith.constant 1.000000e+00 : f32
    %104 = vector.broadcast %cst_29 : f32 to vector<8x128xf32>
    %105 = arith.addf %104, %103 : vector<8x128xf32>
    %106 = arith.divf %104, %105 : vector<8x128xf32>
    %107 = vector.extract_strided_slice %19 {offsets = [0, 128], sizes = [8, 128], strides = [1, 1]} : vector<8x384xf32> to vector<8x128xf32>
    %108 = vector.extract_strided_slice %98 {offsets = [0, 128], sizes = [8, 128], strides = [1, 1]} : vector<8x384xf32> to vector<8x128xf32>
    %109 = arith.addf %107, %108 : vector<8x128xf32>
    %110 = arith.negf %109 : vector<8x128xf32>
    %111 = math.exp %110 : vector<8x128xf32>
    %cst_30 = arith.constant 1.000000e+00 : f32
    %112 = vector.broadcast %cst_30 : f32 to vector<8x128xf32>
    %113 = arith.addf %112, %111 : vector<8x128xf32>
    %114 = arith.divf %112, %113 : vector<8x128xf32>
    %115 = vector.extract_strided_slice %19 {offsets = [0, 256], sizes = [8, 128], strides = [1, 1]} : vector<8x384xf32> to vector<8x128xf32>
    %116 = vector.extract_strided_slice %98 {offsets = [0, 256], sizes = [8, 128], strides = [1, 1]} : vector<8x384xf32> to vector<8x128xf32>
    %117 = arith.addf %116, %37 : vector<8x128xf32>
    %118 = arith.mulf %106, %117 : vector<8x128xf32>
    %119 = arith.addf %115, %118 : vector<8x128xf32>
    %120 = math.tanh %119 : vector<8x128xf32>
    %cst_31 = arith.constant 1.000000e+00 : f32
    %121 = vector.broadcast %cst_31 : f32 to vector<8x128xf32>
    %122 = arith.subf %121, %114 : vector<8x128xf32>
    %123 = arith.mulf %122, %120 : vector<8x128xf32>
    %124 = arith.mulf %114, %96 : vector<8x128xf32>
    %125 = arith.addf %123, %124 : vector<8x128xf32>
    %c0_32 = arith.constant 0 : index
    %c0_33 = arith.constant 0 : index
    %126 = vector.load %arg6[%c0_32, %c0_33] : memref<128x384xf32, #tpu.memory_space<vmem>>, vector<128x384xf32>
    %cst_34 = arith.constant dense<0.000000e+00> : vector<8x384xf32>
    %127 = tpu.matmul %125, %126, %cst_34 {dimension_numbers = #tpu.dot_dimension_numbers<[1], [0], [0], [1], [0, 0, 1, 1], [], []>} : vector<8x128xf32>, vector<128x384xf32>, vector<8x384xf32> -> vector<8x384xf32>
    %128 = vector.extract_strided_slice %22 {offsets = [0, 0], sizes = [8, 128], strides = [1, 1]} : vector<8x384xf32> to vector<8x128xf32>
    %129 = vector.extract_strided_slice %127 {offsets = [0, 0], sizes = [8, 128], strides = [1, 1]} : vector<8x384xf32> to vector<8x128xf32>
    %130 = arith.addf %128, %129 : vector<8x128xf32>
    %131 = arith.negf %130 : vector<8x128xf32>
    %132 = math.exp %131 : vector<8x128xf32>
    %cst_35 = arith.constant 1.000000e+00 : f32
    %133 = vector.broadcast %cst_35 : f32 to vector<8x128xf32>
    %134 = arith.addf %133, %132 : vector<8x128xf32>
    %135 = arith.divf %133, %134 : vector<8x128xf32>
    %136 = vector.extract_strided_slice %22 {offsets = [0, 128], sizes = [8, 128], strides = [1, 1]} : vector<8x384xf32> to vector<8x128xf32>
    %137 = vector.extract_strided_slice %127 {offsets = [0, 128], sizes = [8, 128], strides = [1, 1]} : vector<8x384xf32> to vector<8x128xf32>
    %138 = arith.addf %136, %137 : vector<8x128xf32>
    %139 = arith.negf %138 : vector<8x128xf32>
    %140 = math.exp %139 : vector<8x128xf32>
    %cst_36 = arith.constant 1.000000e+00 : f32
    %141 = vector.broadcast %cst_36 : f32 to vector<8x128xf32>
    %142 = arith.addf %141, %140 : vector<8x128xf32>
    %143 = arith.divf %141, %142 : vector<8x128xf32>
    %144 = vector.extract_strided_slice %22 {offsets = [0, 256], sizes = [8, 128], strides = [1, 1]} : vector<8x384xf32> to vector<8x128xf32>
    %145 = vector.extract_strided_slice %127 {offsets = [0, 256], sizes = [8, 128], strides = [1, 1]} : vector<8x384xf32> to vector<8x128xf32>
    %146 = arith.addf %145, %37 : vector<8x128xf32>
    %147 = arith.mulf %135, %146 : vector<8x128xf32>
    %148 = arith.addf %144, %147 : vector<8x128xf32>
    %149 = math.tanh %148 : vector<8x128xf32>
    %cst_37 = arith.constant 1.000000e+00 : f32
    %150 = vector.broadcast %cst_37 : f32 to vector<8x128xf32>
    %151 = arith.subf %150, %143 : vector<8x128xf32>
    %152 = arith.mulf %151, %149 : vector<8x128xf32>
    %153 = arith.mulf %143, %125 : vector<8x128xf32>
    %154 = arith.addf %152, %153 : vector<8x128xf32>
    %c0_38 = arith.constant 0 : index
    %c0_39 = arith.constant 0 : index
    %155 = vector.load %arg6[%c0_38, %c0_39] : memref<128x384xf32, #tpu.memory_space<vmem>>, vector<128x384xf32>
    %cst_40 = arith.constant dense<0.000000e+00> : vector<8x384xf32>
    %156 = tpu.matmul %154, %155, %cst_40 {dimension_numbers = #tpu.dot_dimension_numbers<[1], [0], [0], [1], [0, 0, 1, 1], [], []>} : vector<8x128xf32>, vector<128x384xf32>, vector<8x384xf32> -> vector<8x384xf32>
    %157 = vector.extract_strided_slice %25 {offsets = [0, 0], sizes = [8, 128], strides = [1, 1]} : vector<8x384xf32> to vector<8x128xf32>
    %158 = vector.extract_strided_slice %156 {offsets = [0, 0], sizes = [8, 128], strides = [1, 1]} : vector<8x384xf32> to vector<8x128xf32>
    %159 = arith.addf %157, %158 : vector<8x128xf32>
    %160 = arith.negf %159 : vector<8x128xf32>
    %161 = math.exp %160 : vector<8x128xf32>
    %cst_41 = arith.constant 1.000000e+00 : f32
    %162 = vector.broadcast %cst_41 : f32 to vector<8x128xf32>
    %163 = arith.addf %162, %161 : vector<8x128xf32>
    %164 = arith.divf %162, %163 : vector<8x128xf32>
    %165 = vector.extract_strided_slice %25 {offsets = [0, 128], sizes = [8, 128], strides = [1, 1]} : vector<8x384xf32> to vector<8x128xf32>
    %166 = vector.extract_strided_slice %156 {offsets = [0, 128], sizes = [8, 128], strides = [1, 1]} : vector<8x384xf32> to vector<8x128xf32>
    %167 = arith.addf %165, %166 : vector<8x128xf32>
    %168 = arith.negf %167 : vector<8x128xf32>
    %169 = math.exp %168 : vector<8x128xf32>
    %cst_42 = arith.constant 1.000000e+00 : f32
    %170 = vector.broadcast %cst_42 : f32 to vector<8x128xf32>
    %171 = arith.addf %170, %169 : vector<8x128xf32>
    %172 = arith.divf %170, %171 : vector<8x128xf32>
    %173 = vector.extract_strided_slice %25 {offsets = [0, 256], sizes = [8, 128], strides = [1, 1]} : vector<8x384xf32> to vector<8x128xf32>
    %174 = vector.extract_strided_slice %156 {offsets = [0, 256], sizes = [8, 128], strides = [1, 1]} : vector<8x384xf32> to vector<8x128xf32>
    %175 = arith.addf %174, %37 : vector<8x128xf32>
    %176 = arith.mulf %164, %175 : vector<8x128xf32>
    %177 = arith.addf %173, %176 : vector<8x128xf32>
    %178 = math.tanh %177 : vector<8x128xf32>
    %cst_43 = arith.constant 1.000000e+00 : f32
    %179 = vector.broadcast %cst_43 : f32 to vector<8x128xf32>
    %180 = arith.subf %179, %172 : vector<8x128xf32>
    %181 = arith.mulf %180, %178 : vector<8x128xf32>
    %182 = arith.mulf %172, %154 : vector<8x128xf32>
    %183 = arith.addf %181, %182 : vector<8x128xf32>
    %c0_44 = arith.constant 0 : index
    %c0_45 = arith.constant 0 : index
    %184 = vector.load %arg6[%c0_44, %c0_45] : memref<128x384xf32, #tpu.memory_space<vmem>>, vector<128x384xf32>
    %cst_46 = arith.constant dense<0.000000e+00> : vector<8x384xf32>
    %185 = tpu.matmul %183, %184, %cst_46 {dimension_numbers = #tpu.dot_dimension_numbers<[1], [0], [0], [1], [0, 0, 1, 1], [], []>} : vector<8x128xf32>, vector<128x384xf32>, vector<8x384xf32> -> vector<8x384xf32>
    %186 = vector.extract_strided_slice %28 {offsets = [0, 0], sizes = [8, 128], strides = [1, 1]} : vector<8x384xf32> to vector<8x128xf32>
    %187 = vector.extract_strided_slice %185 {offsets = [0, 0], sizes = [8, 128], strides = [1, 1]} : vector<8x384xf32> to vector<8x128xf32>
    %188 = arith.addf %186, %187 : vector<8x128xf32>
    %189 = arith.negf %188 : vector<8x128xf32>
    %190 = math.exp %189 : vector<8x128xf32>
    %cst_47 = arith.constant 1.000000e+00 : f32
    %191 = vector.broadcast %cst_47 : f32 to vector<8x128xf32>
    %192 = arith.addf %191, %190 : vector<8x128xf32>
    %193 = arith.divf %191, %192 : vector<8x128xf32>
    %194 = vector.extract_strided_slice %28 {offsets = [0, 128], sizes = [8, 128], strides = [1, 1]} : vector<8x384xf32> to vector<8x128xf32>
    %195 = vector.extract_strided_slice %185 {offsets = [0, 128], sizes = [8, 128], strides = [1, 1]} : vector<8x384xf32> to vector<8x128xf32>
    %196 = arith.addf %194, %195 : vector<8x128xf32>
    %197 = arith.negf %196 : vector<8x128xf32>
    %198 = math.exp %197 : vector<8x128xf32>
    %cst_48 = arith.constant 1.000000e+00 : f32
    %199 = vector.broadcast %cst_48 : f32 to vector<8x128xf32>
    %200 = arith.addf %199, %198 : vector<8x128xf32>
    %201 = arith.divf %199, %200 : vector<8x128xf32>
    %202 = vector.extract_strided_slice %28 {offsets = [0, 256], sizes = [8, 128], strides = [1, 1]} : vector<8x384xf32> to vector<8x128xf32>
    %203 = vector.extract_strided_slice %185 {offsets = [0, 256], sizes = [8, 128], strides = [1, 1]} : vector<8x384xf32> to vector<8x128xf32>
    %204 = arith.addf %203, %37 : vector<8x128xf32>
    %205 = arith.mulf %193, %204 : vector<8x128xf32>
    %206 = arith.addf %202, %205 : vector<8x128xf32>
    %207 = math.tanh %206 : vector<8x128xf32>
    %cst_49 = arith.constant 1.000000e+00 : f32
    %208 = vector.broadcast %cst_49 : f32 to vector<8x128xf32>
    %209 = arith.subf %208, %201 : vector<8x128xf32>
    %210 = arith.mulf %209, %207 : vector<8x128xf32>
    %211 = arith.mulf %201, %183 : vector<8x128xf32>
    %212 = arith.addf %210, %211 : vector<8x128xf32>
    %c0_50 = arith.constant 0 : index
    %c0_51 = arith.constant 0 : index
    %213 = vector.load %arg6[%c0_50, %c0_51] : memref<128x384xf32, #tpu.memory_space<vmem>>, vector<128x384xf32>
    %cst_52 = arith.constant dense<0.000000e+00> : vector<8x384xf32>
    %214 = tpu.matmul %212, %213, %cst_52 {dimension_numbers = #tpu.dot_dimension_numbers<[1], [0], [0], [1], [0, 0, 1, 1], [], []>} : vector<8x128xf32>, vector<128x384xf32>, vector<8x384xf32> -> vector<8x384xf32>
    %215 = vector.extract_strided_slice %31 {offsets = [0, 0], sizes = [8, 128], strides = [1, 1]} : vector<8x384xf32> to vector<8x128xf32>
    %216 = vector.extract_strided_slice %214 {offsets = [0, 0], sizes = [8, 128], strides = [1, 1]} : vector<8x384xf32> to vector<8x128xf32>
    %217 = arith.addf %215, %216 : vector<8x128xf32>
    %218 = arith.negf %217 : vector<8x128xf32>
    %219 = math.exp %218 : vector<8x128xf32>
    %cst_53 = arith.constant 1.000000e+00 : f32
    %220 = vector.broadcast %cst_53 : f32 to vector<8x128xf32>
    %221 = arith.addf %220, %219 : vector<8x128xf32>
    %222 = arith.divf %220, %221 : vector<8x128xf32>
    %223 = vector.extract_strided_slice %31 {offsets = [0, 128], sizes = [8, 128], strides = [1, 1]} : vector<8x384xf32> to vector<8x128xf32>
    %224 = vector.extract_strided_slice %214 {offsets = [0, 128], sizes = [8, 128], strides = [1, 1]} : vector<8x384xf32> to vector<8x128xf32>
    %225 = arith.addf %223, %224 : vector<8x128xf32>
    %226 = arith.negf %225 : vector<8x128xf32>
    %227 = math.exp %226 : vector<8x128xf32>
    %cst_54 = arith.constant 1.000000e+00 : f32
    %228 = vector.broadcast %cst_54 : f32 to vector<8x128xf32>
    %229 = arith.addf %228, %227 : vector<8x128xf32>
    %230 = arith.divf %228, %229 : vector<8x128xf32>
    %231 = vector.extract_strided_slice %31 {offsets = [0, 256], sizes = [8, 128], strides = [1, 1]} : vector<8x384xf32> to vector<8x128xf32>
    %232 = vector.extract_strided_slice %214 {offsets = [0, 256], sizes = [8, 128], strides = [1, 1]} : vector<8x384xf32> to vector<8x128xf32>
    %233 = arith.addf %232, %37 : vector<8x128xf32>
    %234 = arith.mulf %222, %233 : vector<8x128xf32>
    %235 = arith.addf %231, %234 : vector<8x128xf32>
    %236 = math.tanh %235 : vector<8x128xf32>
    %cst_55 = arith.constant 1.000000e+00 : f32
    %237 = vector.broadcast %cst_55 : f32 to vector<8x128xf32>
    %238 = arith.subf %237, %230 : vector<8x128xf32>
    %239 = arith.mulf %238, %236 : vector<8x128xf32>
    %240 = arith.mulf %230, %212 : vector<8x128xf32>
    %241 = arith.addf %239, %240 : vector<8x128xf32>
    %c0_56 = arith.constant 0 : index
    %c0_57 = arith.constant 0 : index
    %242 = vector.load %arg6[%c0_56, %c0_57] : memref<128x384xf32, #tpu.memory_space<vmem>>, vector<128x384xf32>
    %cst_58 = arith.constant dense<0.000000e+00> : vector<8x384xf32>
    %243 = tpu.matmul %241, %242, %cst_58 {dimension_numbers = #tpu.dot_dimension_numbers<[1], [0], [0], [1], [0, 0, 1, 1], [], []>} : vector<8x128xf32>, vector<128x384xf32>, vector<8x384xf32> -> vector<8x384xf32>
    %244 = vector.extract_strided_slice %34 {offsets = [0, 0], sizes = [8, 128], strides = [1, 1]} : vector<8x384xf32> to vector<8x128xf32>
    %245 = vector.extract_strided_slice %243 {offsets = [0, 0], sizes = [8, 128], strides = [1, 1]} : vector<8x384xf32> to vector<8x128xf32>
    %246 = arith.addf %244, %245 : vector<8x128xf32>
    %247 = arith.negf %246 : vector<8x128xf32>
    %248 = math.exp %247 : vector<8x128xf32>
    %cst_59 = arith.constant 1.000000e+00 : f32
    %249 = vector.broadcast %cst_59 : f32 to vector<8x128xf32>
    %250 = arith.addf %249, %248 : vector<8x128xf32>
    %251 = arith.divf %249, %250 : vector<8x128xf32>
    %252 = vector.extract_strided_slice %34 {offsets = [0, 128], sizes = [8, 128], strides = [1, 1]} : vector<8x384xf32> to vector<8x128xf32>
    %253 = vector.extract_strided_slice %243 {offsets = [0, 128], sizes = [8, 128], strides = [1, 1]} : vector<8x384xf32> to vector<8x128xf32>
    %254 = arith.addf %252, %253 : vector<8x128xf32>
    %255 = arith.negf %254 : vector<8x128xf32>
    %256 = math.exp %255 : vector<8x128xf32>
    %cst_60 = arith.constant 1.000000e+00 : f32
    %257 = vector.broadcast %cst_60 : f32 to vector<8x128xf32>
    %258 = arith.addf %257, %256 : vector<8x128xf32>
    %259 = arith.divf %257, %258 : vector<8x128xf32>
    %260 = vector.extract_strided_slice %34 {offsets = [0, 256], sizes = [8, 128], strides = [1, 1]} : vector<8x384xf32> to vector<8x128xf32>
    %261 = vector.extract_strided_slice %243 {offsets = [0, 256], sizes = [8, 128], strides = [1, 1]} : vector<8x384xf32> to vector<8x128xf32>
    %262 = arith.addf %261, %37 : vector<8x128xf32>
    %263 = arith.mulf %251, %262 : vector<8x128xf32>
    %264 = arith.addf %260, %263 : vector<8x128xf32>
    %265 = math.tanh %264 : vector<8x128xf32>
    %cst_61 = arith.constant 1.000000e+00 : f32
    %266 = vector.broadcast %cst_61 : f32 to vector<8x128xf32>
    %267 = arith.subf %266, %259 : vector<8x128xf32>
    %268 = arith.mulf %267, %265 : vector<8x128xf32>
    %269 = arith.mulf %259, %241 : vector<8x128xf32>
    %270 = arith.addf %268, %269 : vector<8x128xf32>
    %271 = vector.extract_strided_slice %270 {offsets = [0, 32], sizes = [8, 96], strides = [1, 1]} : vector<8x128xf32> to vector<8x96xf32>
    %272 = vector.extract_strided_slice %270 {offsets = [0, 0], sizes = [8, 32], strides = [1, 1]} : vector<8x128xf32> to vector<8x32xf32>
    %273 = tpu.concatenate %271, %272 in 1 : vector<8x96xf32>, vector<8x32xf32> -> vector<8x128xf32>
    %274 = arith.addf %67, %273 : vector<8x128xf32>
    %c0_62 = arith.constant 0 : index
    %c0_63 = arith.constant 0 : index
    %c0_64 = arith.constant 0 : index
    %275 = vector.load %arg8[%c0_62, %c0_63, %c0_64] : memref<8x8x128xf32, #tpu.memory_space<vmem>>, vector<1x8x128xf32>
    %276 = vector.shape_cast %275 : vector<1x8x128xf32> to vector<8x128xf32>
    %277 = vector.shape_cast %274 : vector<8x128xf32> to vector<1x8x128xf32>
    tpu.vector_store %arg8[%c0_62, %c0_63, %c0_64], %277 {strides = array<i32>} : memref<8x8x128xf32, #tpu.memory_space<vmem>>, vector<1x8x128xf32>,
    %278 = vector.extract_strided_slice %241 {offsets = [0, 32], sizes = [8, 96], strides = [1, 1]} : vector<8x128xf32> to vector<8x96xf32>
    %279 = vector.extract_strided_slice %241 {offsets = [0, 0], sizes = [8, 32], strides = [1, 1]} : vector<8x128xf32> to vector<8x32xf32>
    %280 = tpu.concatenate %278, %279 in 1 : vector<8x96xf32>, vector<8x32xf32> -> vector<8x128xf32>
    %281 = arith.addf %96, %280 : vector<8x128xf32>
    %c1 = arith.constant 1 : index
    %c0_65 = arith.constant 0 : index
    %c0_66 = arith.constant 0 : index
    %282 = vector.load %arg8[%c1, %c0_65, %c0_66] : memref<8x8x128xf32, #tpu.memory_space<vmem>>, vector<1x8x128xf32>
    %283 = vector.shape_cast %282 : vector<1x8x128xf32> to vector<8x128xf32>
    %284 = vector.shape_cast %281 : vector<8x128xf32> to vector<1x8x128xf32>
    tpu.vector_store %arg8[%c1, %c0_65, %c0_66], %284 {strides = array<i32>} : memref<8x8x128xf32, #tpu.memory_space<vmem>>, vector<1x8x128xf32>,
    %285 = vector.extract_strided_slice %212 {offsets = [0, 32], sizes = [8, 96], strides = [1, 1]} : vector<8x128xf32> to vector<8x96xf32>
    %286 = vector.extract_strided_slice %212 {offsets = [0, 0], sizes = [8, 32], strides = [1, 1]} : vector<8x128xf32> to vector<8x32xf32>
    %287 = tpu.concatenate %285, %286 in 1 : vector<8x96xf32>, vector<8x32xf32> -> vector<8x128xf32>
    %288 = arith.addf %125, %287 : vector<8x128xf32>
    %c2 = arith.constant 2 : index
    %c0_67 = arith.constant 0 : index
    %c0_68 = arith.constant 0 : index
    %289 = vector.load %arg8[%c2, %c0_67, %c0_68] : memref<8x8x128xf32, #tpu.memory_space<vmem>>, vector<1x8x128xf32>
    %290 = vector.shape_cast %289 : vector<1x8x128xf32> to vector<8x128xf32>
    %291 = vector.shape_cast %288 : vector<8x128xf32> to vector<1x8x128xf32>
    tpu.vector_store %arg8[%c2, %c0_67, %c0_68], %291 {strides = array<i32>} : memref<8x8x128xf32, #tpu.memory_space<vmem>>, vector<1x8x128xf32>,
    %292 = vector.extract_strided_slice %183 {offsets = [0, 32], sizes = [8, 96], strides = [1, 1]} : vector<8x128xf32> to vector<8x96xf32>
    %293 = vector.extract_strided_slice %183 {offsets = [0, 0], sizes = [8, 32], strides = [1, 1]} : vector<8x128xf32> to vector<8x32xf32>
    %294 = tpu.concatenate %292, %293 in 1 : vector<8x96xf32>, vector<8x32xf32> -> vector<8x128xf32>
    %295 = arith.addf %154, %294 : vector<8x128xf32>
    %c3 = arith.constant 3 : index
    %c0_69 = arith.constant 0 : index
    %c0_70 = arith.constant 0 : index
    %296 = vector.load %arg8[%c3, %c0_69, %c0_70] : memref<8x8x128xf32, #tpu.memory_space<vmem>>, vector<1x8x128xf32>
    %297 = vector.shape_cast %296 : vector<1x8x128xf32> to vector<8x128xf32>
    %298 = vector.shape_cast %295 : vector<8x128xf32> to vector<1x8x128xf32>
    tpu.vector_store %arg8[%c3, %c0_69, %c0_70], %298 {strides = array<i32>} : memref<8x8x128xf32, #tpu.memory_space<vmem>>, vector<1x8x128xf32>,
    %299 = vector.extract_strided_slice %154 {offsets = [0, 32], sizes = [8, 96], strides = [1, 1]} : vector<8x128xf32> to vector<8x96xf32>
    %300 = vector.extract_strided_slice %154 {offsets = [0, 0], sizes = [8, 32], strides = [1, 1]} : vector<8x128xf32> to vector<8x32xf32>
    %301 = tpu.concatenate %299, %300 in 1 : vector<8x96xf32>, vector<8x32xf32> -> vector<8x128xf32>
    %302 = arith.addf %183, %301 : vector<8x128xf32>
    %c4 = arith.constant 4 : index
    %c0_71 = arith.constant 0 : index
    %c0_72 = arith.constant 0 : index
    %303 = vector.load %arg8[%c4, %c0_71, %c0_72] : memref<8x8x128xf32, #tpu.memory_space<vmem>>, vector<1x8x128xf32>
    %304 = vector.shape_cast %303 : vector<1x8x128xf32> to vector<8x128xf32>
    %305 = vector.shape_cast %302 : vector<8x128xf32> to vector<1x8x128xf32>
    tpu.vector_store %arg8[%c4, %c0_71, %c0_72], %305 {strides = array<i32>} : memref<8x8x128xf32, #tpu.memory_space<vmem>>, vector<1x8x128xf32>,
    %306 = vector.extract_strided_slice %125 {offsets = [0, 32], sizes = [8, 96], strides = [1, 1]} : vector<8x128xf32> to vector<8x96xf32>
    %307 = vector.extract_strided_slice %125 {offsets = [0, 0], sizes = [8, 32], strides = [1, 1]} : vector<8x128xf32> to vector<8x32xf32>
    %308 = tpu.concatenate %306, %307 in 1 : vector<8x96xf32>, vector<8x32xf32> -> vector<8x128xf32>
    %309 = arith.addf %212, %308 : vector<8x128xf32>
    %c5 = arith.constant 5 : index
    %c0_73 = arith.constant 0 : index
    %c0_74 = arith.constant 0 : index
    %310 = vector.load %arg8[%c5, %c0_73, %c0_74] : memref<8x8x128xf32, #tpu.memory_space<vmem>>, vector<1x8x128xf32>
    %311 = vector.shape_cast %310 : vector<1x8x128xf32> to vector<8x128xf32>
    %312 = vector.shape_cast %309 : vector<8x128xf32> to vector<1x8x128xf32>
    tpu.vector_store %arg8[%c5, %c0_73, %c0_74], %312 {strides = array<i32>} : memref<8x8x128xf32, #tpu.memory_space<vmem>>, vector<1x8x128xf32>,
    %313 = vector.extract_strided_slice %96 {offsets = [0, 32], sizes = [8, 96], strides = [1, 1]} : vector<8x128xf32> to vector<8x96xf32>
    %314 = vector.extract_strided_slice %96 {offsets = [0, 0], sizes = [8, 32], strides = [1, 1]} : vector<8x128xf32> to vector<8x32xf32>
    %315 = tpu.concatenate %313, %314 in 1 : vector<8x96xf32>, vector<8x32xf32> -> vector<8x128xf32>
    %316 = arith.addf %241, %315 : vector<8x128xf32>
    %c6 = arith.constant 6 : index
    %c0_75 = arith.constant 0 : index
    %c0_76 = arith.constant 0 : index
    %317 = vector.load %arg8[%c6, %c0_75, %c0_76] : memref<8x8x128xf32, #tpu.memory_space<vmem>>, vector<1x8x128xf32>
    %318 = vector.shape_cast %317 : vector<1x8x128xf32> to vector<8x128xf32>
    %319 = vector.shape_cast %316 : vector<8x128xf32> to vector<1x8x128xf32>
    tpu.vector_store %arg8[%c6, %c0_75, %c0_76], %319 {strides = array<i32>} : memref<8x8x128xf32, #tpu.memory_space<vmem>>, vector<1x8x128xf32>,
    %320 = vector.extract_strided_slice %67 {offsets = [0, 32], sizes = [8, 96], strides = [1, 1]} : vector<8x128xf32> to vector<8x96xf32>
    %321 = vector.extract_strided_slice %67 {offsets = [0, 0], sizes = [8, 32], strides = [1, 1]} : vector<8x128xf32> to vector<8x32xf32>
    %322 = tpu.concatenate %320, %321 in 1 : vector<8x96xf32>, vector<8x32xf32> -> vector<8x128xf32>
    %323 = arith.addf %270, %322 : vector<8x128xf32>
    %c7 = arith.constant 7 : index
    %c0_77 = arith.constant 0 : index
    %c0_78 = arith.constant 0 : index
    %324 = vector.load %arg8[%c7, %c0_77, %c0_78] : memref<8x8x128xf32, #tpu.memory_space<vmem>>, vector<1x8x128xf32>
    %325 = vector.shape_cast %324 : vector<1x8x128xf32> to vector<8x128xf32>
    %326 = vector.shape_cast %323 : vector<8x128xf32> to vector<1x8x128xf32>
    tpu.vector_store %arg8[%c7, %c0_77, %c0_78], %326 {strides = array<i32>} : memref<8x8x128xf32, #tpu.memory_space<vmem>>, vector<1x8x128xf32>,
    %c0_79 = arith.constant 0 : index
    %c0_80 = arith.constant 0 : index
    %c0_81 = arith.constant 0 : index
    %327 = vector.load %arg9[%c0_79, %c0_80, %c0_81] : memref<2x8x128xf32, #tpu.memory_space<vmem>>, vector<1x8x128xf32>
    %328 = vector.shape_cast %327 : vector<1x8x128xf32> to vector<8x128xf32>
    %329 = vector.shape_cast %270 : vector<8x128xf32> to vector<1x8x128xf32>
    tpu.vector_store %arg9[%c0_79, %c0_80, %c0_81], %329 {strides = array<i32>} : memref<2x8x128xf32, #tpu.memory_space<vmem>>, vector<1x8x128xf32>,
    %330 = vector.extract_strided_slice %270 {offsets = [0, 32], sizes = [8, 96], strides = [1, 1]} : vector<8x128xf32> to vector<8x96xf32>
    %331 = vector.extract_strided_slice %270 {offsets = [0, 0], sizes = [8, 32], strides = [1, 1]} : vector<8x128xf32> to vector<8x32xf32>
    %332 = tpu.concatenate %330, %331 in 1 : vector<8x96xf32>, vector<8x32xf32> -> vector<8x128xf32>
    %c1_82 = arith.constant 1 : index
    %c0_83 = arith.constant 0 : index
    %c0_84 = arith.constant 0 : index
    %333 = vector.load %arg9[%c1_82, %c0_83, %c0_84] : memref<2x8x128xf32, #tpu.memory_space<vmem>>, vector<1x8x128xf32>
    %334 = vector.shape_cast %333 : vector<1x8x128xf32> to vector<8x128xf32>
    %335 = vector.shape_cast %332 : vector<8x128xf32> to vector<1x8x128xf32>
    tpu.vector_store %arg9[%c1_82, %c0_83, %c0_84], %335 {strides = array<i32>} : memref<2x8x128xf32, #tpu.memory_space<vmem>>, vector<1x8x128xf32>,
    return
  }
}

</mosaic_0001>

<bundles_post_ra>
// kernel: mctn_encoder.1
= control target key start
LH: loop header
LB: loop body
LE: loop exit
PB: predicated region body
PF: predicated region fallthrough
CT: control target
= control target key end

     0   :  { %15 = vsyncpa [#allocation3], 0  ;;  %s2715_s0 = inlined_call_operand.vmem [shape: f32[64,16], index: 0, kind: input, shape index: {}]   ;;  %s2716_s1 = inlined_call_operand.vmem [shape: f32[8,128], index: 1, kind: input, shape index: {}]   ;;  %s2717_s2 = inlined_call_operand.vmem [shape: f32[16,384], index: 2, kind: input, shape index: {}]   ;;  %s2718_s3 = inlined_call_operand.hbm [shape: f32[16,384], index: 3, kind: input, shape index: {}]   ;;  %s2719_s4 = inlined_call_operand.vmem [shape: f32[1,384], index: 4, kind: input, shape index: {}]   ;;  %s2720_s5 = inlined_call_operand.vmem [shape: f32[1,384], index: 5, kind: input, shape index: {}]   ;;  %s2721_s6 = inlined_call_operand.hbm [shape: f32[128,384], index: 6, kind: input, shape index: {}]   ;;  %s2722_s7 = inlined_call_operand.vmem [shape: f32[1,128], index: 7, kind: input, shape index: {}]   ;;  %s2723_s8 = inlined_call_operand.vmem [shape: f32[8,8,128], index: 8, kind: output, shape index: {0}]   ;;  %s2724_s9 = inlined_call_operand.vmem [shape: f32[2,8,128], index: 9, kind: output, shape index: {1}]  }
   0x1   :  { %s27_s11 = sshll.u32 %s2718_s3, 4  ;;  %s28_s11 = int_to_ptr.hbm [resolvable:$true] %s27_s11 }
   0x2   :  { %16 = vsyncpa [#allocation5], 0  ;;  %s1638_s12 = smov [#allocation2]   ;;  %s44_s16 = sshll.u32 %s2721_s6, 4  ;;  %s45_s16 = int_to_ptr.hbm [resolvable:$true] %s44_s16 }
   0x3   :  { %s29_s13 = sshll.u32 %s1638_s12, 4  ;;  %s1639_s17 = smov 384   ;;  %s30_s13 = int_to_ptr.vmem [resolvable:$true] %s29_s13 }
   0x4   :  { %s1640_s18 = smov 24   ;;  %s1641_s19 = smov [#allocation4]  }
   0x5   :  { %35 = dma.hbm_to_vmem [thread:$0]  %s28_s11, 768, %s30_s13, [#allocation3], %s1639_s17, %s1639_s17, %s1640_s18  }
   0x6   :  { %s46_s20 = sshll.u32 %s1641_s19, 4  ;;  %s47_s20 = int_to_ptr.vmem [resolvable:$true] %s46_s20 }
   0x7   :  { %52 = dma.hbm_to_vmem [thread:$0]  %s45_s16, 6144, %s47_s20, [#allocation5], %s1639_s17, %s1639_s17, %s1640_s18  }
   0x8   :  { %1634 = dma.done.wait [#allocation3], 768  }
   0x9   :  { %1635 = vsyncadd [#allocation3], 4294966528 }
   0xa   :  { %1636 = dma.done.wait [#allocation5], 6144  }
   0xb   :  { %1637 = vsyncadd [#allocation5], 4294961152  ;;  %v74_v0 = vld [vmem:[%s2717_s2 + $0x18] sm:$0xff]  ;;  %v75_v1 = vld [vmem:[%s2717_s2 + $0x20] sm:$0xff]  ;;  %vm85_vm0 = vcmask 130048   ;;  %s1642_s27 = smov 96  }
   0xc   :  { %v76_v2 = vld [vmem:[%s2717_s2 + $0x28] sm:$0xff]  ;;  %124 = vmatpush.msra.mxu0 %v74_v0  ;;  %165 = vmatpush.msra.mxu1 %v75_v1  ;;  %v236_v3 = vld [vmem:[#allocation2 + $0x18] sm:$0xff]  ;;  %v71_v4 = vld [vmem:[%s2717_s2] sm:$0xff] }
   0xd   :  { %v72_v5 = vld [vmem:[%s2717_s2 + $0x8] sm:$0xff]  ;;  %206 = vmatpush.msra.mxu2 %v76_v2  ;;  %261 = vmatpush.msra.mxu3 %v236_v3  ;;  %v73_v6 = vld [vmem:[%s2717_s2 + $0x10] sm:$0xff]  ;;  %v233_v7 = vld [vmem:[#allocation2] sm:$0xff] }
   0xe   :  { %v1720_v8 = vld [vmem:[%s2715_s0] sm:$0xff]  ;;  %125 = vmatpush.msra.mxu0 %v71_v4  ;;  %166 = vmatpush.msra.mxu1 %v72_v5  ;;  %v238_v10 = vld [vmem:[#allocation2 + $0x28] sm:$0xff]  ;;  %v1726_v11 = vld [vmem:[#allocation4 + $0x168] sm:$0xff] }
   0xf   :  { %207 = vmatpush.msra.mxu2 %v73_v6  ;;  %262 = vmatpush.msra.mxu3 %v233_v7  ;;  %v237_v9 = vld [vmem:[#allocation2 + $0x20] sm:$0xff]  ;;  %v234_v12 = vld [vmem:[#allocation2 + $0x8] sm:$0xff]  ;;  %v1744_v16 = vld [vmem:[#allocation4 + $0x120] sm:$0xff] }
  0x10   :  { %1379 = vmatmul.msk.f32.vlgmr.msra.gmra.mxu0 %vm85_vm0, %v1720_v8  ;;  %1387 = vmatmul.msk.f32.vlgmr.msra.gmra.mxu1 %vm85_vm0, %v1720_v8  ;;  %v1732_v13 = vld [vmem:[#allocation4 + $0x150] sm:$0xff]  ;;  %v1735_v14 = vld [vmem:[#allocation4 + $0x138] sm:$0xff]  ;;  %v1754_v17 = vld [vmem:[#allocation4 + $0x108] sm:$0xff] }
  0x11   :  { %1395 = vmatmul.msk.f32.vlgmr.msra.gmra.mxu2 %vm85_vm0, %v1720_v8  ;;  %1403 = vmatmul.msk.f32.vlgmr.msra.gmra.mxu3 %vm85_vm0, %v1720_v8  ;;  %v1740_v15 = vld [vmem:[%s2715_s0 + $0x8] sm:$0xff]  ;;  %v1757_v18 = vld [vmem:[#allocation4 + $0xf0] sm:$0xff]  ;;  %v1763_v19 = vld [vmem:[%s2715_s0 + $0x10] sm:$0xff] }
  0x12   :  { %302 = vmatpush.msrb.mxu0 %v237_v9  ;;  %343 = vmatpush.msrb.mxu1 %v238_v10  ;;  %v1766_v20 = vld [vmem:[#allocation4 + $0xd8] sm:$0xff]  ;;  %v1776_v21 = vld [vmem:[#allocation4 + $0xc0] sm:$0xff]  ;;  %v1779_v22 = vld [vmem:[#allocation4 + $0x170] sm:$0xff] }
  0x13   :  { %447 = vmatpush.msrb.mxu2 %v1726_v11  ;;  %v235_v23 = vld [vmem:[#allocation2 + $0x10] sm:$0xff]  ;;  %v1781_v24 = vld [vmem:[#allocation4 + $0xa8] sm:$0xff]  ;;  %467 = vmatpush.msrb.mxu3 %v1779_v22  ;;  %v1792_v26 = vld [vmem:[#allocation4 + $0x90] sm:$0xff] }
  0x14   :  { %303 = vmatpush.msrb.mxu0 %v234_v12  ;;  %2779 = vst [vmem:[#allocation8_spill] sm:$0xff] %v1781_v24  ;;  %344 = vmatpush.msrb.mxu1 %v235_v23  ;;  %v1789_v25 = vld [vmem:[%s2715_s0 + $0x18] sm:$0xff]  ;;  %v1802_v27 = vld [vmem:[#allocation4 + $0x78] sm:$0xff]  ;;  %v1810_v30 = vld [vmem:[#allocation4 + $0x140] sm:$0xff] }
  0x15   :  { %448 = vmatpush.msrb.mxu2 %v1732_v13  ;;  %2780 = vst [vmem:[#allocation9_spill] sm:$0xff] %v1792_v26  ;;  %v1804_v28 = vld [vmem:[#allocation4 + $0x158] sm:$0xff]  ;;  %v1812_v31 = vld [vmem:[#allocation4 + $0x60] sm:$0xff]  ;;  %v1823_v33 = vld [vmem:[%s2715_s0 + $0x20] sm:$0xff] }
  0x16   :  { %575 = vmatpush.msra.mxu0 %v1779_v22  ;;  %2781 = vst [vmem:[#allocation10_spill] sm:$0xff] %v1802_v27  ;;  %468 = vmatpush.msrb.mxu3 %v1804_v28  ;;  %v1808_v29 = vld [vmem:[#allocation4 + $0x178] sm:$0xff]  ;;  %v1818_v32 = vld [vmem:[#allocation4 + $0x160] sm:$0xff]  ;;  %v1828_v34 = vld [vmem:[#allocation4 + $0x48] sm:$0xff] }
  0x17   :  { %449 = vmatpush.msrb.mxu2 %v1735_v14  ;;  %2782 = vst [vmem:[#allocation11_spill] sm:$0xff] %v1812_v31  ;;  %595 = vmatpush.msra.mxu1 %v1808_v29  ;;  %v1838_v35 = vld [vmem:[#allocation4 + $0x30] sm:$0xff]  ;;  %v1840_v36 = vld [vmem:[#allocation4 + $0x128] sm:$0xff]  ;;  %v1848_v39 = vld [vmem:[#allocation4 + $0x18] sm:$0xff] }
  0x18   :  { %1380 = vmatmul.msk.f32.gmra.mxu0 %vm85_vm0, %v1740_v15  ;;  %1388 = vmatmul.msk.f32.gmra.mxu1 %vm85_vm0, %v1740_v15  ;;  %2783 = vst [vmem:[#allocation12_spill] sm:$0xff] %v1828_v34  ;;  %v1843_v37 = vld [vmem:[#allocation4 + $0x148] sm:$0xff]  ;;  %v1846_v38 = vld [vmem:[#allocation4 + $0x110] sm:$0xff]  ;;  %v1859_v41 = vld [vmem:[%s2715_s0 + $0x28] sm:$0xff] }
  0x19   :  { %1396 = vmatmul.msk.f32.gmra.mxu2 %vm85_vm0, %v1740_v15  ;;  %1404 = vmatmul.msk.f32.gmra.mxu3 %vm85_vm0, %v1740_v15  ;;  %2784 = vst [vmem:[#allocation13_spill] sm:$0xff] %v1838_v35  ;;  %v1853_v40 = vld [vmem:[#allocation4 + $0x130] sm:$0xff]  ;;  %v1864_v42 = vld [vmem:[#allocation4 + $0x118] sm:$0xff]  ;;  %v1866_v43 = vld [vmem:[#allocation4] sm:$0xff] }
  0x1a   :  { %450 = vmatpush.msrb.mxu2 %v1744_v16  ;;  %576 = vmatpush.msra.mxu0 %v1804_v28  ;;  %2785 = vst [vmem:[#allocation14_spill] sm:$0xff] %v1848_v39  ;;  %v1873_v44 = vld [vmem:[#allocation4 + $0xf8] sm:$0xff]  ;;  %v1879_v45 = vld [vmem:[#allocation4 + $0xe0] sm:$0xff]  ;;  %v1895_v48 = vld [vmem:[#allocation4 + $0xe8] sm:$0xff] }
  0x1b   :  { %469 = vmatpush.msrb.mxu3 %v1810_v30  ;;  %596 = vmatpush.msra.mxu1 %v1818_v32  ;;  %2786 = vst [vmem:[#allocation15_spill] sm:$0xff] %v1866_v43  ;;  %v1884_v46 = vld [vmem:[#allocation4 + $0x100] sm:$0xff]  ;;  %v1904_v49 = vld [vmem:[#allocation4 + $0xc8] sm:$0xff]  ;;  %v1910_v50 = vld [vmem:[#allocation4 + $0xb0] sm:$0xff] }
  0x1c   :  { %451 = vmatpush.msrb.mxu2 %v1754_v17  ;;  %577 = vmatpush.msra.mxu0 %v1810_v30  ;;  %v1892_v47 = vld [vmem:[%s2715_s0 + $0x30] sm:$0xff]  ;;  %2787 = vst [vmem:[#allocation16_spill] sm:$0xff] %v1910_v50  ;;  %v1913_v51 = vld [vmem:[#allocation4 + $0xd0] sm:$0xff]  ;;  %v1919_v52 = vld [vmem:[#allocation4 + $0xb8] sm:$0xff] }
  0x1d   :  { %470 = vmatpush.msrb.mxu3 %v1840_v36  ;;  %597 = vmatpush.msra.mxu1 %v1843_v37  ;;  %2788 = vst [vmem:[#allocation17_spill] sm:$0xff] %v1919_v52  ;;  %v1925_v53 = vld [vmem:[%s2715_s0 + $0x38] sm:$0xff]  ;;  %v1930_v54 = vld [vmem:[#allocation4 + $0xa0] sm:$0xff]  ;;  %v1937_v55 = vld [vmem:[#allocation4 + $0x98] sm:$0xff] }
  0x1e   :  { %452 = vmatpush.msrb.mxu2 %v1757_v18  ;;  %578 = vmatpush.msra.mxu0 %v1840_v36  ;;  %2789 = vst [vmem:[#allocation18_spill] sm:$0xff] %v1930_v54  ;;  %v1943_v56 = vld [vmem:[#allocation4 + $0x80] sm:$0xff]  ;;  %v1946_v57 = vld [vmem:[#allocation4 + $0x88] sm:$0xff]  ;;  %v1952_v58 = vld [vmem:[#allocation4 + $0x70] sm:$0xff] }
  0x1f   :  { %471 = vmatpush.msrb.mxu3 %v1846_v38  ;;  %598 = vmatpush.msra.mxu1 %v1853_v40  ;;  %2790 = vst [vmem:[#allocation19_spill] sm:$0xff] %v1937_v55  ;;  %v1960_v59 = vld [vmem:[%s2716_s1] sm:$0xff]  ;;  %v1963_v60 = vld [vmem:[#allocation4 + $0x58] sm:$0xff]  ;;  %v1970_v61 = vld [vmem:[#allocation4 + $0x68] sm:$0xff] }
  0x20   :  { %1381 = vmatmul.msk.f32.gmra.mxu0 %vm85_vm0, %v1763_v19  ;;  %1389 = vmatmul.msk.f32.gmra.mxu1 %vm85_vm0, %v1763_v19  ;;  %2791 = vst [vmem:[#allocation20_spill] sm:$0xff] %v1943_v56  ;;  %v1972_v62 = vld [vmem:[#allocation4 + $0x50] sm:$0xff]  ;;  %v1977_v63 = vld [vmem:[#allocation4 + $0x40] sm:$0xff]  ;;  %v1983_v0 = vld [vmem:[#allocation4 + $0x28] sm:$0xff] }
  0x21   :  { %1397 = vmatmul.msk.f32.gmra.mxu2 %vm85_vm0, %v1763_v19  ;;  %1405 = vmatmul.msk.f32.gmra.mxu3 %vm85_vm0, %v1763_v19  ;;  %2792 = vst [vmem:[#allocation21_spill] sm:$0xff] %v1946_v57  ;;  %v1988_v1 = vld [vmem:[#allocation4 + $0x10] sm:$0xff]  ;;  %v1995_v2 = vld [vmem:[#allocation4 + $0x38] sm:$0xff]  ;;  %v1997_v3 = vld [vmem:[#allocation4 + $0x20] sm:$0xff] }
  0x22   :  { %453 = vmatpush.msrb.mxu2 %v1766_v20  ;;  %579 = vmatpush.msra.mxu0 %v1846_v38  ;;  %2793 = vst [vmem:[#allocation22_spill] sm:$0xff] %v1952_v58  ;;  %v2014_v4 = vld [vmem:[#allocation4 + $0x8] sm:$0xff]  ;;  %v2120_v7 = vld [vmem:[%s2720_s5] sm:$0x7] }
  0x23   :  { %599 = vmatpush.msra.mxu1 %v1864_v42  ;;  %472 = vmatpush.msrb.mxu3 %v1873_v44  ;;  %2794 = vst [vmem:[#allocation23_spill] sm:$0xff] %v1963_v60  ;;  %v2128_v9 = vperm.slane %v2120_v7, 0 }
  0x24   :  { %454 = vmatpush.msrb.mxu2 %v1776_v21  ;;  %580 = vmatpush.msra.mxu0 %v1873_v44  ;;  %2795 = vst [vmem:[#allocation24_spill] sm:$0xff] %v1970_v61 }
  0x25   :  { %473 = vmatpush.msrb.mxu3 %v1879_v45  ;;  %600 = vmatpush.msra.mxu1 %v1884_v46  ;;  %2796 = vst [vmem:[#allocation25_spill] sm:$0xff] %v1972_v62 }
  0x26   :  { %455 = vmatpush.msrb.mxu2 %v1781_v24  ;;  %581 = vmatpush.msra.mxu0 %v1879_v45  ;;  %2797 = vst [vmem:[#allocation26_spill] sm:$0xff] %v1977_v63 }
  0x27   :  { %601 = vmatpush.msra.mxu1 %v1895_v48  ;;  %474 = vmatpush.msrb.mxu3 %v1904_v49  ;;  %2798 = vst [vmem:[#allocation27_spill] sm:$0xff] %v1983_v0 }
  0x28   :  { %1382 = vmatmul.msk.f32.gmra.mxu0 %vm85_vm0, %v1789_v25  ;;  %1390 = vmatmul.msk.f32.gmra.mxu1 %vm85_vm0, %v1789_v25  ;;  %2799 = vst [vmem:[#allocation28_spill] sm:$0xff] %v1988_v1 }
  0x29   :  { %1398 = vmatmul.msk.f32.gmra.mxu2 %vm85_vm0, %v1789_v25  ;;  %1406 = vmatmul.msk.f32.gmra.mxu3 %vm85_vm0, %v1789_v25  ;;  %2800 = vst [vmem:[#allocation29_spill] sm:$0xff] %v1995_v2 }
  0x2a   :  { %456 = vmatpush.msrb.mxu2 %v1792_v26  ;;  %582 = vmatpush.msra.mxu0 %v1904_v49  ;;  %2801 = vst [vmem:[#allocation30_spill] sm:$0xff] %v1997_v3 }
  0x2b   :  { %602 = vmatpush.msra.mxu1 %v1913_v51  ;;  %475 = vmatpush.msrb.mxu3 %v1910_v50  ;;  %2802 = vst [vmem:[#allocation31_spill] sm:$0xff] %v2014_v4 }
  0x2c   :  { %457 = vmatpush.msrb.mxu2 %v1802_v27  ;;  %583 = vmatpush.msra.mxu0 %v1910_v50 }
  0x2d   :  { %603 = vmatpush.msra.mxu1 %v1919_v52  ;;  %476 = vmatpush.msrb.mxu3 %v1937_v55 }
  0x2e   :  { %458 = vmatpush.msrb.mxu2 %v1812_v31  ;;  %584 = vmatpush.msra.mxu0 %v1937_v55 }
  0x2f   :  { %604 = vmatpush.msra.mxu1 %v1930_v54  ;;  %477 = vmatpush.msrb.mxu3 %v1943_v56 }
  0x30   :  { %1383 = vmatmul.msk.f32.gmra.mxu0 %vm85_vm0, %v1823_v33  ;;  %1391 = vmatmul.msk.f32.gmra.mxu1 %vm85_vm0, %v1823_v33 }
  0x31   :  { %1399 = vmatmul.msk.f32.gmra.mxu2 %vm85_vm0, %v1823_v33  ;;  %1407 = vmatmul.msk.f32.gmra.mxu3 %vm85_vm0, %v1823_v33 }
  0x32   :  { %459 = vmatpush.msrb.mxu2 %v1828_v34  ;;  %605 = vmatpush.msra.mxu1 %v1946_v57 }
  0x33   :  { %585 = vmatpush.msra.mxu0 %v1943_v56  ;;  %478 = vmatpush.msrb.mxu3 %v1970_v61 }
  0x34   :  { %460 = vmatpush.msrb.mxu2 %v1838_v35  ;;  %606 = vmatpush.msra.mxu1 %v1952_v58 }
  0x35   :  { %586 = vmatpush.msra.mxu0 %v1970_v61  ;;  %479 = vmatpush.msrb.mxu3 %v1972_v62 }
  0x36   :  { %461 = vmatpush.msrb.mxu2 %v1848_v39  ;;  %607 = vmatpush.msra.mxu1 %v1963_v60 }
  0x37   :  { %587 = vmatpush.msra.mxu0 %v1972_v62  ;;  %480 = vmatpush.msrb.mxu3 %v1995_v2 }
  0x38   :  { %1384 = vmatmul.msk.f32.gmra.mxu0 %vm85_vm0, %v1859_v41  ;;  %1392 = vmatmul.msk.f32.gmra.mxu1 %vm85_vm0, %v1859_v41 }
  0x39   :  { %1400 = vmatmul.msk.f32.gmra.mxu2 %vm85_vm0, %v1859_v41  ;;  %1408 = vmatmul.msk.f32.gmra.mxu3 %vm85_vm0, %v1859_v41 }
  0x3a   :  { %462 = vmatpush.msrb.mxu2 %v1866_v43  ;;  %608 = vmatpush.msra.mxu1 %v1977_v63 }
  0x3b   :  { %588 = vmatpush.msra.mxu0 %v1995_v2  ;;  %481 = vmatpush.msrb.mxu3 %v1997_v3 }
  0x3c   :  { %487 = vmatpush.msra.mxu2 %v1808_v29  ;;  %609 = vmatpush.msra.mxu1 %v1983_v0 }
  0x3d   :  { %589 = vmatpush.msra.mxu0 %v1997_v3  ;;  %482 = vmatpush.msrb.mxu3 %v2014_v4 }
  0x3e   :  { %488 = vmatpush.msra.mxu2 %v1818_v32  ;;  %610 = vmatpush.msra.mxu1 %v1988_v1 }
  0x3f   :  { %590 = vmatpush.msra.mxu0 %v2014_v4  ;;  %555 = vmatpush.msra.mxu3 %v1726_v11 }
  0x40   :  { %489 = vmatpush.msra.mxu2 %v1843_v37  ;;  %1385 = vmatmul.msk.f32.gmra.mxu0 %vm85_vm0, %v1892_v47 }
  0x41   :  { %1393 = vmatmul.msk.f32.gmra.mxu1 %vm85_vm0, %v1892_v47  ;;  %1401 = vmatmul.msk.f32.gmra.mxu2 %vm85_vm0, %v1892_v47 }
  0x42   :  { %1409 = vmatmul.msk.f32.gmra.mxu3 %vm85_vm0, %v1892_v47  ;;  %490 = vmatpush.msra.mxu2 %v1853_v40 }
  0x43   :  { %556 = vmatpush.msra.mxu3 %v1732_v13 }
  0x44   :  { %491 = vmatpush.msra.mxu2 %v1864_v42 }
  0x45   :  { %557 = vmatpush.msra.mxu3 %v1735_v14 }
  0x46   :  { %492 = vmatpush.msra.mxu2 %v1884_v46 }
  0x47   :  { %558 = vmatpush.msra.mxu3 %v1744_v16 }
  0x48   :  { %1386 = vmatmul.msk.f32.gmra.mxu0 %vm85_vm0, %v1925_v53  ;;  %493 = vmatpush.msra.mxu2 %v1895_v48 }
  0x49   :  { %1394 = vmatmul.msk.f32.gmra.mxu1 %vm85_vm0, %v1925_v53  ;;  %1402 = vmatmul.msk.f32.gmra.mxu2 %vm85_vm0, %v1925_v53 }
  0x4a   :  { %1410 = vmatmul.msk.f32.gmra.mxu3 %vm85_vm0, %v1925_v53  ;;  %494 = vmatpush.msra.mxu2 %v1913_v51 }
  0x4b   :  { %559 = vmatpush.msra.mxu3 %v1754_v17 }
  0x4c   :  { %495 = vmatpush.msra.mxu2 %v1919_v52 }
  0x4d   :  { %560 = vmatpush.msra.mxu3 %v1757_v18 }
  0x4e   :  { %496 = vmatpush.msra.mxu2 %v1930_v54 }
  0x4f   :  { %561 = vmatpush.msra.mxu3 %v1766_v20 }
  0x50   :  { %1411 = vmatmul.msk.f32.vlgmr.msrb.gmra.mxu0 %vm85_vm0, %v1720_v8  ;;  %497 = vmatpush.msra.mxu2 %v1946_v57 }
  0x51   :  { %1419 = vmatmul.msk.f32.vlgmr.msrb.gmra.mxu1 %vm85_vm0, %v1720_v8  ;;  %463 = vmatmul.f32.vlgmr.msrb.gmra.mxu2 %v1960_v59  ;;  %v77_v8 = vld [vmem:[%s2719_s4] sm:$0x7] }
  0x52   :  { %498 = vmatpush.msra.mxu2 %v1952_v58  ;;  %771 = vmatpush.msrb.mxu1 %v1726_v11  ;;  %v2132_v10 = vperm.slane %v77_v8, 0  ;;  %v2134_v12 = vperm.slane %v77_v8, 1 }
  0x53   :  { %483 = vmatmul.f32.vlgmr.msrb.gmra.mxu3 %v1960_v59  ;;  %703 = vmatpush.msrb.mxu0 %v1808_v29 }
  0x54   :  { %499 = vmatpush.msra.mxu2 %v1963_v60  ;;  %772 = vmatpush.msrb.mxu1 %v1732_v13 }
  0x55   :  { %704 = vmatpush.msrb.mxu0 %v1818_v32  ;;  %562 = vmatpush.msra.mxu3 %v1776_v21 }
  0x56   :  { %500 = vmatpush.msra.mxu2 %v1977_v63  ;;  %773 = vmatpush.msrb.mxu1 %v1735_v14 }
  0x57   :  { %705 = vmatpush.msrb.mxu0 %v1843_v37  ;;  %563 = vmatpush.msra.mxu3 %v1781_v24 }
  0x58   :  { %1412 = vmatmul.msk.f32.gmra.mxu0 %vm85_vm0, %v1740_v15  ;;  %501 = vmatpush.msra.mxu2 %v1983_v0 }
  0x59   :  { %1420 = vmatmul.msk.f32.gmra.mxu1 %vm85_vm0, %v1740_v15  ;;  %706 = vmatpush.msrb.mxu0 %v1853_v40 }
  0x5a   :  { %502 = vmatpush.msra.mxu2 %v1988_v1  ;;  %774 = vmatpush.msrb.mxu1 %v1744_v16 }
  0x5b   :  { %503 = vmatmul.f32.vlgmr.msra.gmra.mxu2 %v1960_v59  ;;  %707 = vmatpush.msrb.mxu0 %v1864_v42 }
  0x5c   :  { %663 = vmatpush.msrb.mxu2 %v1726_v11  ;;  %775 = vmatpush.msrb.mxu1 %v1754_v17 }
  0x5d   :  { %708 = vmatpush.msrb.mxu0 %v1884_v46  ;;  %564 = vmatpush.msra.mxu3 %v1792_v26 }
  0x5e   :  { %664 = vmatpush.msrb.mxu2 %v1732_v13  ;;  %776 = vmatpush.msrb.mxu1 %v1757_v18 }
  0x5f   :  { %709 = vmatpush.msrb.mxu0 %v1895_v48  ;;  %565 = vmatpush.msra.mxu3 %v1802_v27 }
  0x60   :  { %1413 = vmatmul.msk.f32.gmra.mxu0 %vm85_vm0, %v1763_v19  ;;  %665 = vmatpush.msrb.mxu2 %v1735_v14 }
  0x61   :  { %1421 = vmatmul.msk.f32.gmra.mxu1 %vm85_vm0, %v1763_v19  ;;  %710 = vmatpush.msrb.mxu0 %v1913_v51 }
  0x62   :  { %666 = vmatpush.msrb.mxu2 %v1744_v16  ;;  %777 = vmatpush.msrb.mxu1 %v1766_v20 }
  0x63   :  { %711 = vmatpush.msrb.mxu0 %v1919_v52  ;;  %566 = vmatpush.msra.mxu3 %v1812_v31 }
  0x64   :  { %667 = vmatpush.msrb.mxu2 %v1754_v17  ;;  %778 = vmatpush.msrb.mxu1 %v1776_v21 }
  0x65   :  { %712 = vmatpush.msrb.mxu0 %v1930_v54  ;;  %567 = vmatpush.msra.mxu3 %v1828_v34 }
  0x66   :  { %668 = vmatpush.msrb.mxu2 %v1757_v18  ;;  %779 = vmatpush.msrb.mxu1 %v1781_v24 }
  0x67   :  { %713 = vmatpush.msrb.mxu0 %v1946_v57  ;;  %568 = vmatpush.msra.mxu3 %v1838_v35 }
  0x68   :  { %1414 = vmatmul.msk.f32.gmra.mxu0 %vm85_vm0, %v1789_v25  ;;  %669 = vmatpush.msrb.mxu2 %v1766_v20 }
  0x69   :  { %1422 = vmatmul.msk.f32.gmra.mxu1 %vm85_vm0, %v1789_v25  ;;  %714 = vmatpush.msrb.mxu0 %v1952_v58 }
  0x6a   :  { %670 = vmatpush.msrb.mxu2 %v1776_v21  ;;  %780 = vmatpush.msrb.mxu1 %v1792_v26 }
  0x6b   :  { %569 = vmatpush.msra.mxu3 %v1848_v39  ;;  %715 = vmatpush.msrb.mxu0 %v1963_v60 }
  0x6c   :  { %671 = vmatpush.msrb.mxu2 %v1781_v24  ;;  %781 = vmatpush.msrb.mxu1 %v1802_v27 }
  0x6d   :  { %570 = vmatpush.msra.mxu3 %v1866_v43  ;;  %716 = vmatpush.msrb.mxu0 %v1977_v63 }
  0x6e   :  { %672 = vmatpush.msrb.mxu2 %v1792_v26  ;;  %782 = vmatpush.msrb.mxu1 %v1812_v31 }
  0x6f   :  { %683 = vmatpush.msrb.mxu3 %v1779_v22  ;;  %717 = vmatpush.msrb.mxu0 %v1983_v0 }
  0x70   :  { %1415 = vmatmul.msk.f32.gmra.mxu0 %vm85_vm0, %v1823_v33  ;;  %673 = vmatpush.msrb.mxu2 %v1802_v27 }
  0x71   :  { %1423 = vmatmul.msk.f32.gmra.mxu1 %vm85_vm0, %v1823_v33  ;;  %684 = vmatpush.msrb.mxu3 %v1804_v28 }
  0x72   :  { %674 = vmatpush.msrb.mxu2 %v1812_v31  ;;  %783 = vmatpush.msrb.mxu1 %v1828_v34 }
  0x73   :  { %685 = vmatpush.msrb.mxu3 %v1810_v30  ;;  %718 = vmatpush.msrb.mxu0 %v1988_v1 }
  0x74   :  { %675 = vmatpush.msrb.mxu2 %v1828_v34  ;;  %784 = vmatpush.msrb.mxu1 %v1838_v35 }
  0x75   :  { %686 = vmatpush.msrb.mxu3 %v1840_v36 }
  0x76   :  { %676 = vmatpush.msrb.mxu2 %v1838_v35  ;;  %785 = vmatpush.msrb.mxu1 %v1848_v39 }
  0x77   :  { %687 = vmatpush.msrb.mxu3 %v1846_v38 }
  0x78   :  { %1416 = vmatmul.msk.f32.gmra.mxu0 %vm85_vm0, %v1859_v41  ;;  %677 = vmatpush.msrb.mxu2 %v1848_v39 }
  0x79   :  { %1424 = vmatmul.msk.f32.gmra.mxu1 %vm85_vm0, %v1859_v41  ;;  %688 = vmatpush.msrb.mxu3 %v1873_v44 }
  0x7a   :  { %678 = vmatpush.msrb.mxu2 %v1866_v43  ;;  %786 = vmatpush.msrb.mxu1 %v1866_v43 }
  0x7b   :  { %689 = vmatpush.msrb.mxu3 %v1879_v45 }
  0x7c   :  { %791 = vmatpush.msra.mxu2 %v1779_v22 }
  0x7d   :  { %690 = vmatpush.msrb.mxu3 %v1904_v49 }
  0x7e   :  { %792 = vmatpush.msra.mxu2 %v1804_v28 }
  0x7f   :  { %691 = vmatpush.msrb.mxu3 %v1910_v50 }
  0x80   :  { %1417 = vmatmul.msk.f32.gmra.mxu0 %vm85_vm0, %v1892_v47  ;;  %793 = vmatpush.msra.mxu2 %v1810_v30 }
  0x81   :  { %1425 = vmatmul.msk.f32.gmra.mxu1 %vm85_vm0, %v1892_v47  ;;  %692 = vmatpush.msrb.mxu3 %v1937_v55 }
  0x82   :  { %794 = vmatpush.msra.mxu2 %v1840_v36 }
  0x83   :  { %693 = vmatpush.msrb.mxu3 %v1943_v56 }
  0x84   :  { %795 = vmatpush.msra.mxu2 %v1846_v38 }
  0x85   :  { %694 = vmatpush.msrb.mxu3 %v1970_v61 }
  0x86   :  { %796 = vmatpush.msra.mxu2 %v1873_v44 }
  0x87   :  { %695 = vmatpush.msrb.mxu3 %v1972_v62 }
  0x88   :  { %1418 = vmatmul.msk.f32.gmra.mxu0 %vm85_vm0, %v1925_v53  ;;  %797 = vmatpush.msra.mxu2 %v1879_v45 }
  0x89   :  { %1426 = vmatmul.msk.f32.gmra.mxu1 %vm85_vm0, %v1925_v53  ;;  %v2153_v53 = vperm.slane %v77_v8, 2  ;;  %696 = vmatpush.msrb.mxu3 %v1995_v2 }
  0x8a   :  { %798 = vmatpush.msra.mxu2 %v1904_v49 }
  0x8b   :  { %697 = vmatpush.msrb.mxu3 %v1997_v3 }
  0x8c   :  { %799 = vmatpush.msra.mxu2 %v1910_v50 }
  0x8d   :  { %v2109_v5 = vpop.f32.mrf.mxu0  ;;  %v2111_v6 = vpop.f32.mrf.mxu1  ;;  %698 = vmatpush.msrb.mxu3 %v2014_v4 }
  0x8e   :  { %800 = vmatpush.msra.mxu2 %v1937_v55 }
  0x90   :  { %801 = vmatpush.msra.mxu2 %v1943_v56 }
  0x92   :  { %802 = vmatpush.msra.mxu2 %v1970_v61 }
  0x94   :  { %v2136_v15 = vpop.f32.mrf.mxu2  ;;  %v264_v19 = vpop.f32.mrf.mxu3  ;;  %803 = vmatpush.msra.mxu2 %v1972_v62 }
  0x95   :  { %v2139_v23 = vadd.f32 %v264_v19, %v2128_v9  ;;  %v130_v25 = vpop.f32.mrf.mxu0  ;;  %v171_v33 = vpop.f32.mrf.mxu1 }
  0x96   :  { %v2144_v41 = vadd.f32 %v130_v25, %v2132_v10  ;;  %v2147_v47 = vadd.f32 %v171_v33, %v2134_v12  ;;  %804 = vmatpush.msra.mxu2 %v1995_v2 }
  0x98   :  { %805 = vmatpush.msra.mxu2 %v1997_v3 }
  0x9a   :  { %806 = vmatpush.msra.mxu2 %v2014_v4 }
  0x9c   :  { %v212_v19 = vpop.f32.mrf.mxu2  ;;  %v267_v25 = vpop.f32.mrf.mxu3 }
  0x9d   :  { %v2158_v43 = vadd.f32 %v212_v19, %v2153_v53  ;;  %v268_v33 = vadd.f32 %v267_v25, %v2128_v9  ;;  %v133_v1 = vpop.f32.mrf.mxu0  ;;  %v174_v39 = vpop.f32.mrf.mxu1 }
  0x9e   :  { %v134_v8 = vadd.f32 %v133_v1, %v2132_v10  ;;  %v2165_v0 = vadd.f32 %v174_v39, %v2134_v12 }
  0xa4   :  { %v215_v19 = vpop.f32.mrf.mxu2  ;;  %v270_v25 = vpop.f32.mrf.mxu3 }
  0xa5   :  { %v2173_v35 = vadd.f32 %v215_v19, %v2153_v53  ;;  %v271_v1 = vadd.f32 %v270_v25, %v2128_v9  ;;  %v136_v63 = vpop.f32.mrf.mxu0  ;;  %v177_v39 = vpop.f32.mrf.mxu1 }
  0xa6   :  { %v137_v34 = vadd.f32 %v136_v63, %v2132_v10  ;;  %v2179_v62 = vadd.f32 %v177_v39, %v2134_v12 }
  0xac   :  { %v218_v60 = vpop.f32.mrf.mxu2  ;;  %v273_v2 = vpop.f32.mrf.mxu3 }
  0xad   :  { %v2182_v3 = vadd.f32 %v218_v60, %v2153_v53  ;;  %v274_v61 = vadd.f32 %v273_v2, %v2128_v9  ;;  %v139_v19 = vpop.f32.mrf.mxu0  ;;  %v180_v31 = vpop.f32.mrf.mxu1 }
  0xae   :  { %v140_v25 = vadd.f32 %v139_v19, %v2132_v10  ;;  %v2187_v58 = vadd.f32 %v180_v31, %v2134_v12 }
  0xb0   :  { %v2189_v4 = vadd.f32 %v274_v61, %v140_v25 }
  0xb2   :  { %2803 = vst [vmem:[#allocation32_spill] sm:$0xff] %v2189_v4 }
  0xb4   :  { %v221_v63 = vpop.f32.mrf.mxu2  ;;  %v276_v56 = vpop.f32.mrf.mxu3 }
  0xb5   :  { %v2192_v39 = vadd.f32 %v221_v63, %v2153_v53  ;;  %v277_v27 = vadd.f32 %v276_v56, %v2128_v9  ;;  %v142_v60 = vpop.f32.mrf.mxu0  ;;  %v183_v57 = vpop.f32.mrf.mxu1 }
  0xb6   :  { %v143_v2 = vadd.f32 %v142_v60, %v2132_v10  ;;  %v184_v55 = vadd.f32 %v183_v57, %v2134_v12 }
  0xb7   :  { %v2197_v26 = vadd.f32 %v277_v27, %v137_v34 }
  0xb8   :  { %v2199_v19 = vadd.f32 %v271_v1, %v143_v2 }
  0xb9   :  { %2804 = vst [vmem:[#allocation33_spill] sm:$0xff] %v2197_v26 }
  0xba   :  { %2805 = vst [vmem:[#allocation34_spill] sm:$0xff] %v2199_v19 }
  0xbc   :  { %v224_v31 = vpop.f32.mrf.mxu2  ;;  %v279_v61 = vpop.f32.mrf.mxu3 }
  0xbd   :  { %v225_v25 = vadd.f32 %v224_v31, %v2153_v53  ;;  %v280_v4 = vadd.f32 %v279_v61, %v2128_v9  ;;  %v145_v63 = vpop.f32.mrf.mxu0 }
  0xbe   :  { %v186_v54 = vpop.f32.mrf.mxu1  ;;  %v146_v56 = vadd.f32 %v145_v63, %v2132_v10 }
  0xbf   :  { %v187_v50 = vadd.f32 %v186_v54, %v2134_v12  ;;  %v2205_v24 = vadd.f32 %v280_v4, %v134_v8  ;;  %v2220_v4 = vperm.slane %v2120_v7, 1 }
  0xc0   :  { %v2207_v60 = vadd.f32 %v268_v33, %v146_v56  ;;  %v2223_v33 = vperm.slane %v2120_v7, 2  ;;  %v128_v7 = vadd.f32 %v2109_v5, %v2132_v10 }
  0xc1   :  { %2806 = vst [vmem:[#allocation35_spill] sm:$0xff] %v2205_v24 }
  0xc2   :  { %2807 = vst [vmem:[#allocation36_spill] sm:$0xff] %v2207_v60 }
  0xc4   :  { %v227_v27 = vpop.f32.mrf.mxu2 }
  0xc5   :  { %v282_v34 = vpop.f32.mrf.mxu3  ;;  %v228_v57 = vadd.f32 %v227_v27, %v2153_v53  ;;  %v148_v2 = vpop.f32.mrf.mxu0 }
  0xc6   :  { %v283_v1 = vadd.f32 %v282_v34, %v2128_v9  ;;  %v189_v31 = vpop.f32.mrf.mxu1  ;;  %v149_v61 = vadd.f32 %v148_v2, %v2132_v10 }
  0xc7   :  { %v190_v19 = vadd.f32 %v189_v31, %v2134_v12 }
  0xc8   :  { %v2214_v63 = vadd.f32 %v283_v1, %v2144_v41  ;;  %v2217_v54 = vadd.f32 %v2139_v23, %v149_v61 }
  0xca   :  { %2808 = vst [vmem:[#allocation37_spill] sm:$0xff] %v2214_v63 }
  0xcb   :  { %2809 = vst [vmem:[#allocation38_spill] sm:$0xff] %v2217_v54 }
  0xcc   :  { %v230_v8 = vpop.f32.mrf.mxu2 }
  0xcd   :  { %v285_v56 = vpop.f32.mrf.mxu3  ;;  %v231_v27 = vadd.f32 %v230_v8, %v2153_v53  ;;  %v305_v34 = vpop.f32.mrf.mxu0 }
  0xce   :  { %v346_v2 = vpop.f32.mrf.mxu1  ;;  %v306_v31 = vadd.f32 %v305_v34, %v2220_v4  ;;  %v286_v1 = vadd.f32 %v285_v56, %v2128_v9 }
  0xcf   :  { %v347_v41 = vadd.f32 %v346_v2, %v2223_v33 }
  0xd0   :  { %v2231_v61 = vadd.f32 %v306_v31, %v190_v19  ;;  %v370_v54 = vadd.f32 %v286_v1, %v128_v7 }
  0xd1   :  { %v2229_v23 = vadd.f32 %v347_v41, %v231_v27 }
  0xd2   :  { %2811 = vst [vmem:[#allocation40_spill] sm:$0xff] %v2231_v61 }
  0xd3   :  { %2810 = vst [vmem:[#allocation39_spill] sm:$0xff] %v2229_v23 }
  0xd4   :  { %v464_v60 = vpop.f32.mrf.mxu2 }
  0xd5   :  { %v507_v26 = vadd.f32 %v464_v60, %v370_v54  ;;  %v308_v24 = vpop.f32.mrf.mxu0 }
  0xd6   :  { %v349_v8 = vpop.f32.mrf.mxu1  ;;  %v309_v63 = vadd.f32 %v308_v24, %v2220_v4 }
  0xd7   :  { %v350_v34 = vadd.f32 %v349_v8, %v2223_v33  ;;  %v1427_v52 = vmul.f32 -1.442695, %v507_v26 }
  0xd8   :  { %v2239_v9 = vadd.f32 %v309_v63, %v187_v50 }
  0xd9   :  { %v2237_v2 = vadd.f32 %v350_v34, %v228_v57  ;;  %1457 = vpow2.f32 %v1427_v52 }
  0xda   :  { %2813 = vst [vmem:[#allocation42_spill] sm:$0xff] %v2239_v9 }
  0xdb   :  { %2812 = vst [vmem:[#allocation41_spill] sm:$0xff] %v2237_v2 }
  0xdd   :  { %v311_v19 = vpop.f32.mrf.mxu0 }
  0xde   :  { %v352_v56 = vpop.f32.mrf.mxu1  ;;  %v312_v27 = vadd.f32 %v311_v19, %v2220_v4 }
  0xdf   :  { %v353_v5 = vadd.f32 %v352_v56, %v2223_v33  ;;  %v1458_v54 = vpop.eup %1457 }
  0xe0   :  { %v2245_v60 = vadd.f32 %v312_v27, %v184_v55  ;;  %v511_v24 = vadd.f32 1.0, %v1458_v54 }
  0xe1   :  { %v2243_v10 = vadd.f32 %v353_v5, %v225_v25 }
  0xe2   :  { %2815 = vst [vmem:[#allocation44_spill] sm:$0xff] %v2245_v60  ;;  %1459 = vrcp.f32 %v511_v24  ;;  %vm517_vm2 = vweird.f32 %v511_v24 }
  0xe3   :  { %2814 = vst [vmem:[#allocation43_spill] sm:$0xff] %v2243_v10 }
  0xe5   :  { %v314_v31 = vpop.f32.mrf.mxu0 }
  0xe6   :  { %v355_v41 = vpop.f32.mrf.mxu1  ;;  %v315_v26 = vadd.f32 %v314_v31, %v2220_v4 }
  0xe7   :  { %v356_v50 = vadd.f32 %v355_v41, %v2223_v33 }
  0xe8   :  { %v2253_v57 = vadd.f32 %v315_v26, %v2187_v58  ;;  %v1460_v7 = vpop.eup %1459 }
  0xe9   :  { %v2250_v52 = vadd.f32 %v356_v50, %v2192_v39  ;;  %v513_v19 = vmul.f32 %v1460_v7, %v511_v24  ;;  %vm518_vm1 = vweird.f32 %v1460_v7 }
  0xea   :  { %2817 = vst [vmem:[#allocation46_spill] sm:$0xff] %v2253_v57  ;;  %vm519_vm3 = vmor %vm517_vm2, %vm518_vm1 }
  0xeb   :  { %2816 = vst [vmem:[#allocation45_spill] sm:$0xff] %v2250_v52  ;;  %v514_v27 = vsub.f32 1.0, %v513_v19  ;;  %v504_v19 = vpop.f32.mrf.mxu2 }
  0xed   :  { %v317_v63 = vpop.f32.mrf.mxu0  ;;  %v515_v41 = vmul.f32 %v1460_v7, %v514_v27 }
  0xee   :  { %v358_v25 = vpop.f32.mrf.mxu1  ;;  %v318_v55 = vadd.f32 %v317_v63, %v2220_v4 }
  0xef   :  { %v359_v1 = vadd.f32 %v358_v25, %v2223_v33  ;;  %v516_v50 = vadd.f32 %v1460_v7, %v515_v41  ;;  %v523_v25 = vand.u32 2147483648, %v511_v24 }
  0xf0   :  { %v2261_v34 = vadd.f32 %v318_v55, %v2179_v62  ;;  %v2276_v55 = vld [vmem:[%s2722_s7] ss:$0 sm:$0xff] }
  0xf1   :  { %v2258_v8 = vadd.f32 %v359_v1, %v2182_v3  ;;  %v547_v27 = vadd.f32 %v2276_v55, %v504_v19 }
  0xf5   :  { %v320_v39 = vpop.f32.mrf.mxu0 }
  0xf6   :  { %v361_v56 = vpop.f32.mrf.mxu1  ;;  %v321_v58 = vadd.f32 %v320_v39, %v2220_v4  ;;  %v520_v39 = vsel %vm519_vm3, %v1460_v7, %v516_v50 }
  0xf7   :  { %v362_v5 = vadd.f32 %v361_v56, %v2223_v33  ;;  %v524_v56 = vor.u32 1.1754944e-38, %v523_v25 }
  0xf8   :  { %v2269_v31 = vadd.f32 %v321_v58, %v2165_v0 }
  0xf9   :  { %v2266_v54 = vadd.f32 %v362_v5, %v2173_v35  ;;  %v521_v35 = vand.u32 2147483647, %v511_v24 }
  0xfb   :  { %vm522_vm4 = vcmp.eq.f32.partialorder %v521_v35, 8.507059e+37 }
  0xfc   :  { %v525_v58 = vsel %vm522_vm4, %v524_v56, %v520_v39 }
  0xfd   :  { %v323_v3 = vpop.f32.mrf.mxu0 }
  0xfe   :  { %v364_v26 = vpop.f32.mrf.mxu1  ;;  %v324_v62 = vadd.f32 %v323_v3, %v2220_v4  ;;  %v169_v3 = vadd.f32 %v2111_v6, %v2134_v12 }
  0xff   :  { %v365_v63 = vadd.f32 %v364_v26, %v2223_v33  ;;  %v484_v26 = vpop.f32.mrf.mxu3 }
 0x100   :  { %v2282_v1 = vadd.f32 %v324_v62, %v2147_v47  ;;  %v548_v62 = vmul.f32 %v547_v27, %v525_v58 }
 0x101   :  { %v2279_v0 = vadd.f32 %v365_v63, %v2158_v43  ;;  %v210_v43 = vadd.f32 %v2136_v15, %v2153_v53 }
 0x105   :  { %v326_v5 = vpop.f32.mrf.mxu0 }
 0x106   :  { %v367_v41 = vpop.f32.mrf.mxu1  ;;  %v327_v24 = vadd.f32 %v326_v5, %v2220_v4 }
 0x107   :  { %v368_v47 = vadd.f32 %v367_v41, %v2223_v33 }
 0x108   :  { %v371_v50 = vadd.f32 %v327_v24, %v169_v3 }
 0x109   :  { %v372_v7 = vadd.f32 %v368_v47, %v210_v43  ;;  %v2836_v47 = vld [vmem:[#allocation29_spill] sm:$0xff] }
 0x10a   :  { %v527_v25 = vadd.f32 %v484_v26, %v371_v50  ;;  %v2837_v26 = vld [vmem:[#allocation27_spill] sm:$0xff]  ;;  %v2840_v50 = vld [vmem:[#allocation28_spill] sm:$0xff] }
 0x10b   :  { %v549_v63 = vadd.f32 %v548_v62, %v372_v7  ;;  %v2838_v62 = vld [vmem:[#allocation14_spill] sm:$0xff] }
 0x10c   :  { %v1428_v35 = vmul.f32 -1.442695, %v527_v25  ;;  %v2839_v7 = vld [vmem:[#allocation30_spill] sm:$0xff]  ;;  %v2842_v25 = vld [vmem:[#allocation31_spill] sm:$0xff] }
 0x10e   :  { %1461 = vpow2.f32 %v1428_v35 }
 0x114   :  { %v1462_v19 = vpop.eup %1461 }
 0x115   :  { %v531_v39 = vadd.f32 1.0, %v1462_v19 }
 0x117   :  { %1463 = vrcp.f32 %v531_v39  ;;  %v543_v23 = vand.u32 2147483648, %v531_v39  ;;  %v541_v53 = vand.u32 2147483647, %v531_v39  ;;  %vm537_vm6 = vweird.f32 %v531_v39 }
 0x118   :  { %1465 = vtanh.f32 %v549_v63  ;;  %v2841_v63 = vld [vmem:[#allocation15_spill] sm:$0xff] }
 0x119   :  { %v544_v33 = vor.u32 1.1754944e-38, %v543_v23  ;;  %vm542_vm8 = vcmp.eq.f32.partialorder %v541_v53, 8.507059e+37  ;;  %v2835_v23 = vld [vmem:[#allocation13_spill] sm:$0xff] }
 0x11d   :  { %v1464_v56 = vpop.eup %1463 }
 0x11e   :  { %v533_v6 = vmul.f32 %v1464_v56, %v531_v39  ;;  %vm538_vm5 = vweird.f32 %v1464_v56  ;;  %v1466_v41 = vpop.eup %1465 }
 0x11f   :  { %vm539_vm7 = vmor %vm537_vm6, %vm538_vm5 }
 0x120   :  { %v534_v12 = vsub.f32 1.0, %v533_v6  ;;  %v2843_v6 = vld [vmem:[#allocation37_spill] sm:$0xff] }
 0x122   :  { %v535_v15 = vmul.f32 %v1464_v56, %v534_v12 }
 0x124   :  { %v536_v4 = vadd.f32 %v1464_v56, %v535_v15 }
 0x126   :  { %v540_v27 = vsel %vm539_vm7, %v1464_v56, %v536_v4 }
 0x127   :  { %v545_v58 = vsel %vm542_vm8, %v544_v33, %v540_v27 }
 0x128   :  { %v551_v5 = vsub.f32 1.0, %v545_v58  ;;  %v553_v43 = vmul.f32 %v545_v58, %v1960_v59  ;;  %v2834_v59 = vld [vmem:[#allocation26_spill] sm:$0xff] }
 0x12a   :  { %v552_v3 = vmul.f32 %v1466_v41, %v551_v5 }
 0x12c   :  { %v2292_v24 = vadd.f32 %v553_v43, %v552_v3 }
 0x12e   :  { %2818 = vst [vmem:[#allocation47_spill] sm:$0xff] %v2292_v24  ;;  %571 = vmatmul.f32.vlgmr.msra.gmra.mxu3 %v2292_v24  ;;  %591 = vmatmul.f32.vlgmr.msra.gmra.mxu0 %v2292_v24 }
 0x12f   :  { %611 = vmatmul.f32.vlgmr.msra.gmra.mxu1 %v2292_v24  ;;  %811 = vmatpush.msra.mxu3 %v1808_v29  ;;  %v2829_v29 = vld [vmem:[#allocation11_spill] sm:$0xff] }
 0x130   :  { %879 = vmatpush.msra.mxu0 %v1726_v11  ;;  %899 = vmatpush.msra.mxu1 %v1779_v22  ;;  %v2819_v11 = vld [vmem:[#allocation17_spill] sm:$0xff]  ;;  %v2826_v22 = vld [vmem:[#allocation10_spill] sm:$0xff] }
 0x131   :  { %812 = vmatpush.msra.mxu3 %v1818_v32  ;;  %v2831_v32 = vld [vmem:[#allocation23_spill] sm:$0xff] }
 0x132   :  { %880 = vmatpush.msra.mxu0 %v1732_v13  ;;  %900 = vmatpush.msra.mxu1 %v1804_v28  ;;  %v2820_v13 = vld [vmem:[#allocation8_spill] sm:$0xff] }
 0x133   :  { %813 = vmatpush.msra.mxu3 %v1843_v37  ;;  %v2827_v28 = vld [vmem:[#allocation20_spill] sm:$0xff] }
 0x134   :  { %881 = vmatpush.msra.mxu0 %v1735_v14  ;;  %901 = vmatpush.msra.mxu1 %v1810_v30  ;;  %v2821_v14 = vld [vmem:[#allocation16_spill] sm:$0xff] }
 0x135   :  { %814 = vmatpush.msra.mxu3 %v1853_v40  ;;  %v2830_v30 = vld [vmem:[#allocation24_spill] sm:$0xff] }
 0x136   :  { %882 = vmatpush.msra.mxu0 %v1744_v16  ;;  %902 = vmatpush.msra.mxu1 %v1840_v36  ;;  %v2822_v16 = vld [vmem:[#allocation18_spill] sm:$0xff]  ;;  %v2832_v36 = vld [vmem:[#allocation12_spill] sm:$0xff] }
 0x137   :  { %815 = vmatpush.msra.mxu3 %v1864_v42 }
 0x138   :  { %883 = vmatpush.msra.mxu0 %v1754_v17  ;;  %903 = vmatpush.msra.mxu1 %v1846_v38  ;;  %v2823_v17 = vld [vmem:[#allocation9_spill] sm:$0xff] }
 0x139   :  { %816 = vmatpush.msra.mxu3 %v1884_v46  ;;  %v2833_v38 = vld [vmem:[#allocation25_spill] sm:$0xff] }
 0x13a   :  { %884 = vmatpush.msra.mxu0 %v1757_v18  ;;  %904 = vmatpush.msra.mxu1 %v1873_v44  ;;  %v2824_v18 = vld [vmem:[#allocation19_spill] sm:$0xff] }
 0x13b   :  { %817 = vmatpush.msra.mxu3 %v1895_v48 }
 0x13c   :  { %885 = vmatpush.msra.mxu0 %v1766_v20  ;;  %905 = vmatpush.msra.mxu1 %v1879_v45  ;;  %v2825_v20 = vld [vmem:[#allocation21_spill] sm:$0xff] }
 0x13d   :  { %818 = vmatpush.msra.mxu3 %v1913_v51 }
 0x13e   :  { %886 = vmatpush.msra.mxu0 %v1776_v21  ;;  %906 = vmatpush.msra.mxu1 %v1904_v49  ;;  %v2828_v21 = vld [vmem:[#allocation22_spill] sm:$0xff] }
 0x13f   :  { %819 = vmatpush.msra.mxu3 %v2819_v11 }
 0x140   :  { %887 = vmatpush.msra.mxu0 %v2820_v13  ;;  %907 = vmatpush.msra.mxu1 %v2821_v14 }
 0x141   :  { %820 = vmatpush.msra.mxu3 %v2822_v16 }
 0x142   :  { %888 = vmatpush.msra.mxu0 %v2823_v17  ;;  %908 = vmatpush.msra.mxu1 %v2824_v18 }
 0x143   :  { %821 = vmatpush.msra.mxu3 %v2825_v20 }
 0x144   :  { %889 = vmatpush.msra.mxu0 %v2826_v22  ;;  %909 = vmatpush.msra.mxu1 %v2827_v28 }
 0x145   :  { %822 = vmatpush.msra.mxu3 %v2828_v21 }
 0x146   :  { %890 = vmatpush.msra.mxu0 %v2829_v29  ;;  %910 = vmatpush.msra.mxu1 %v2830_v30 }
 0x147   :  { %823 = vmatpush.msra.mxu3 %v2831_v32 }
 0x148   :  { %891 = vmatpush.msra.mxu0 %v2832_v36  ;;  %911 = vmatpush.msra.mxu1 %v2833_v38 }
 0x149   :  { %824 = vmatpush.msra.mxu3 %v2834_v59 }
 0x14a   :  { %892 = vmatpush.msra.mxu0 %v2835_v23  ;;  %912 = vmatpush.msra.mxu1 %v2836_v47 }
 0x14b   :  { %825 = vmatpush.msra.mxu3 %v2837_v26 }
 0x14c   :  { %893 = vmatpush.msra.mxu0 %v2838_v62  ;;  %913 = vmatpush.msra.mxu1 %v2839_v7 }
 0x14d   :  { %826 = vmatpush.msra.mxu3 %v2840_v50 }
 0x14e   :  { %894 = vmatpush.msra.mxu0 %v2841_v63  ;;  %914 = vmatpush.msra.mxu1 %v2842_v25 }
 0x1ab   :  { %v592_v35 = vpop.f32.mrf.mxu0 }
 0x1ac   :  { %v635_v19 = vadd.f32 %v592_v35, %v2282_v1  ;;  %v612_v36 = vpop.f32.mrf.mxu1 }
 0x1ad   :  { %v655_v63 = vadd.f32 %v2276_v55, %v612_v36  ;;  %v2377_v36 = vld [vmem:[#allocation4 + $0x140] sm:$0xff] }
 0x1ae   :  { %v1430_v39 = vmul.f32 -1.442695, %v635_v19 }
 0x1b0   :  { %1467 = vpow2.f32 %v1430_v39 }
 0x1b1   :  { %v572_v56 = vpop.f32.mrf.mxu3 }
 0x1b2   :  { %v615_v12 = vadd.f32 %v572_v56, %v2843_v6 }
 0x1b4   :  { %v1429_v15 = vmul.f32 -1.442695, %v615_v12 }
 0x1b6   :  { %v1468_v53 = vpop.eup %1467  ;;  %1469 = vpow2.f32 %v1429_v15 }
 0x1b7   :  { %v639_v4 = vadd.f32 1.0, %v1468_v53 }
 0x1b9   :  { %1471 = vrcp.f32 %v639_v4  ;;  %v651_v56 = vand.u32 2147483648, %v639_v4  ;;  %vm645_vm14 = vweird.f32 %v639_v4  ;;  %v649_v12 = vand.u32 2147483647, %v639_v4 }
 0x1bb   :  { %vm650_vm0 = vcmp.eq.f32.partialorder %v649_v12, 8.507059e+37 }
 0x1bc   :  { %v1470_v33 = vpop.eup %1469 }
 0x1bd   :  { %v619_v27 = vadd.f32 1.0, %v1470_v33  ;;  %v652_v33 = vor.u32 1.1754944e-38, %v651_v56 }
 0x1bf   :  { %1473 = vrcp.f32 %v619_v27  ;;  %v1472_v58 = vpop.eup %1471  ;;  %v631_v1 = vand.u32 2147483648, %v619_v27  ;;  %v629_v22 = vand.u32 2147483647, %v619_v27  ;;  %vm625_vm10 = vweird.f32 %v619_v27 }
 0x1c0   :  { %v641_v5 = vmul.f32 %v1472_v58, %v639_v4  ;;  %vm646_vm13 = vweird.f32 %v1472_v58  ;;  %v2355_v4 = vld [vmem:[#allocation4 + $0x178] sm:$0xff] }
 0x1c1   :  { %v632_v62 = vor.u32 1.1754944e-38, %v631_v1  ;;  %vm630_vm12 = vcmp.eq.f32.partialorder %v629_v22, 8.507059e+37  ;;  %vm647_vm15 = vmor %vm645_vm14, %vm646_vm13  ;;  %v2364_v1 = vld [vmem:[#allocation4 + $0x160] sm:$0xff]  ;;  %v2370_v22 = vld [vmem:[#allocation4 + $0x158] sm:$0xff] }
 0x1c2   :  { %v642_v43 = vsub.f32 1.0, %v641_v5 }
 0x1c4   :  { %v643_v29 = vmul.f32 %v1472_v58, %v642_v43 }
 0x1c5   :  { %v1474_v41 = vpop.eup %1473 }
 0x1c6   :  { %v621_v3 = vmul.f32 %v1474_v41, %v619_v27  ;;  %vm626_vm9 = vweird.f32 %v1474_v41  ;;  %v644_v19 = vadd.f32 %v1472_v58, %v643_v29  ;;  %v2374_v29 = vld [vmem:[#allocation4 + $0x138] sm:$0xff] }
 0x1c7   :  { %vm627_vm11 = vmor %vm625_vm10, %vm626_vm9 }
 0x1c8   :  { %v622_v13 = vsub.f32 1.0, %v621_v3  ;;  %v648_v53 = vsel %vm647_vm15, %v1472_v58, %v644_v19  ;;  %v2361_v58 = vld [vmem:[#allocation4 + $0x170] sm:$0xff] }
 0x1c9   :  { %v653_v27 = vsel %vm650_vm0, %v652_v33, %v648_v53 }
 0x1ca   :  { %v623_v17 = vmul.f32 %v1474_v41, %v622_v13  ;;  %v659_v5 = vsub.f32 1.0, %v653_v27 }
 0x1cc   :  { %v624_v23 = vadd.f32 %v1474_v41, %v623_v17  ;;  %v2367_v17 = vld [vmem:[#allocation4 + $0x150] sm:$0xff] }
 0x1ce   :  { %v628_v35 = vsel %vm627_vm11, %v1474_v41, %v624_v23  ;;  %v661_v41 = vmul.f32 %v653_v27, %v2292_v24  ;;  %v2381_v23 = vld [vmem:[#allocation4 + $0x120] sm:$0xff] }
 0x1cf   :  { %v633_v39 = vsel %vm630_vm12, %v632_v62, %v628_v35  ;;  %v2384_v62 = vld [vmem:[#allocation4 + $0x128] sm:$0xff]  ;;  %v2400_v35 = vld [vmem:[#allocation4 + $0xd8] sm:$0xff] }
 0x1d0   :  { %v656_v6 = vmul.f32 %v655_v63, %v633_v39  ;;  %v2391_v63 = vld [vmem:[#allocation4 + $0x110] sm:$0xff] }
 0x1d2   :  { %v657_v15 = vadd.f32 %v656_v6, %v2279_v0  ;;  %v2358_v0 = vld [vmem:[#allocation4 + $0x168] sm:$0xff] }
 0x1d4   :  { %1475 = vtanh.f32 %v657_v15 }
 0x1da   :  { %v1476_v3 = vpop.eup %1475 }
 0x1db   :  { %v660_v43 = vmul.f32 %v1476_v3, %v659_v5 }
 0x1dd   :  { %v2350_v13 = vadd.f32 %v661_v41, %v660_v43 }
 0x1df   :  { %2844 = vst [vmem:[#allocation17_spill] sm:$0xff] %v2350_v13  ;;  %679 = vmatmul.f32.vlgmr.msrb.gmra.mxu2 %v2350_v13  ;;  %699 = vmatmul.f32.vlgmr.msrb.gmra.mxu3 %v2350_v13 }
 0x1e0   :  { %719 = vmatmul.f32.vlgmr.msrb.gmra.mxu0 %v2350_v13  ;;  %919 = vmatpush.msrb.mxu2 %v2355_v4 }
 0x1e1   :  { %987 = vmatpush.msrb.mxu3 %v2358_v0  ;;  %1007 = vmatpush.msrb.mxu0 %v2361_v58 }
 0x1e2   :  { %920 = vmatpush.msrb.mxu2 %v2364_v1 }
 0x1e3   :  { %988 = vmatpush.msrb.mxu3 %v2367_v17  ;;  %1008 = vmatpush.msrb.mxu0 %v2370_v22 }
 0x1e4   :  { %921 = vmatpush.msrb.mxu2 %v1843_v37  ;;  %v2388_v37 = vld [vmem:[#allocation4 + $0x108] sm:$0xff] }
 0x1e5   :  { %989 = vmatpush.msrb.mxu3 %v2374_v29  ;;  %1009 = vmatpush.msrb.mxu0 %v2377_v36 }
 0x1e6   :  { %922 = vmatpush.msrb.mxu2 %v1853_v40  ;;  %v2395_v40 = vld [vmem:[#allocation4 + $0xf0] sm:$0xff] }
 0x1e7   :  { %990 = vmatpush.msrb.mxu3 %v2381_v23  ;;  %1010 = vmatpush.msrb.mxu0 %v2384_v62 }
 0x1e8   :  { %923 = vmatpush.msrb.mxu2 %v1864_v42  ;;  %v2405_v42 = vld [vmem:[#allocation4 + $0xc0] sm:$0xff] }
 0x1e9   :  { %991 = vmatpush.msrb.mxu3 %v2388_v37  ;;  %1011 = vmatpush.msrb.mxu0 %v2391_v63 }
 0x1ea   :  { %924 = vmatpush.msrb.mxu2 %v1884_v46  ;;  %v2410_v46 = vld [vmem:[#allocation4 + $0xa8] sm:$0xff] }
 0x1eb   :  { %992 = vmatpush.msrb.mxu3 %v2395_v40  ;;  %1012 = vmatpush.msrb.mxu0 %v1873_v44  ;;  %v2415_v44 = vld [vmem:[#allocation4 + $0x90] sm:$0xff] }
 0x1ec   :  { %925 = vmatpush.msrb.mxu2 %v1895_v48  ;;  %v2425_v48 = vld [vmem:[#allocation4 + $0x60] sm:$0xff] }
 0x1ed   :  { %993 = vmatpush.msrb.mxu3 %v2400_v35  ;;  %1013 = vmatpush.msrb.mxu0 %v1879_v45  ;;  %v2420_v45 = vld [vmem:[#allocation4 + $0x78] sm:$0xff] }
 0x1ee   :  { %926 = vmatpush.msrb.mxu2 %v1913_v51  ;;  %v2435_v51 = vld [vmem:[#allocation4 + $0x30] sm:$0xff] }
 0x1ef   :  { %994 = vmatpush.msrb.mxu3 %v2405_v42  ;;  %1014 = vmatpush.msrb.mxu0 %v1904_v49  ;;  %v2430_v49 = vld [vmem:[#allocation4 + $0x48] sm:$0xff]  ;;  %2845 = vst [vmem:[#allocation8_spill] sm:$0xff] %v2435_v51 }
 0x1f0   :  { %927 = vmatpush.msrb.mxu2 %v2819_v11  ;;  %v2440_v11 = vld [vmem:[#allocation4 + $0x18] sm:$0xff] }
 0x1f1   :  { %995 = vmatpush.msrb.mxu3 %v2410_v46  ;;  %1015 = vmatpush.msrb.mxu0 %v2821_v14  ;;  %2846 = vst [vmem:[#allocation16_spill] sm:$0xff] %v2440_v11  ;;  %v2445_v14 = vld [vmem:[#allocation4] sm:$0xff] }
 0x1f2   :  { %928 = vmatpush.msrb.mxu2 %v2822_v16  ;;  %2847 = vst [vmem:[#allocation18_spill] sm:$0xff] %v2445_v14 }
 0x1f3   :  { %996 = vmatpush.msrb.mxu3 %v2415_v44  ;;  %1016 = vmatpush.msrb.mxu0 %v2824_v18 }
 0x1f4   :  { %929 = vmatpush.msrb.mxu2 %v2825_v20  ;;  %v2848_v20 = vld [vmem:[#allocation35_spill] sm:$0xff] }
 0x1f5   :  { %997 = vmatpush.msrb.mxu3 %v2420_v45  ;;  %1017 = vmatpush.msrb.mxu0 %v2827_v28 }
 0x1f6   :  { %930 = vmatpush.msrb.mxu2 %v2828_v21 }
 0x1f7   :  { %998 = vmatpush.msrb.mxu3 %v2425_v48  ;;  %1018 = vmatpush.msrb.mxu0 %v2830_v30 }
 0x1f8   :  { %931 = vmatpush.msrb.mxu2 %v2831_v32 }
 0x1f9   :  { %999 = vmatpush.msrb.mxu3 %v2430_v49  ;;  %1019 = vmatpush.msrb.mxu0 %v2833_v38 }
 0x1fa   :  { %932 = vmatpush.msrb.mxu2 %v2834_v59 }
 0x1fb   :  { %1000 = vmatpush.msrb.mxu3 %v2435_v51  ;;  %1020 = vmatpush.msrb.mxu0 %v2836_v47 }
 0x1fc   :  { %933 = vmatpush.msrb.mxu2 %v2837_v26 }
 0x1fd   :  { %1001 = vmatpush.msrb.mxu3 %v2440_v11  ;;  %1021 = vmatpush.msrb.mxu0 %v2839_v7 }
 0x1fe   :  { %934 = vmatpush.msrb.mxu2 %v2840_v50 }
 0x1ff   :  { %1002 = vmatpush.msrb.mxu3 %v2445_v14  ;;  %1022 = vmatpush.msrb.mxu0 %v2842_v25 }
 0x25d   :  { %v720_v15 = vpop.f32.mrf.mxu0 }
 0x25e   :  { %v763_v5 = vadd.f32 %v2276_v55, %v720_v15  ;;  %v2501_v15 = vld [vmem:[#allocation4 + $0xb8] sm:$0xff] }
 0x262   :  { %v680_v16 = vpop.f32.mrf.mxu2  ;;  %v700_v18 = vpop.f32.mrf.mxu3 }
 0x263   :  { %v723_v28 = vadd.f32 %v680_v16, %v2848_v20  ;;  %v743_v21 = vadd.f32 %v700_v18, %v2269_v31 }
 0x265   :  { %v1431_v30 = vmul.f32 -1.442695, %v723_v28  ;;  %v1432_v32 = vmul.f32 -1.442695, %v743_v21 }
 0x267   :  { %1477 = vpow2.f32 %v1431_v30 }
 0x268   :  { %1479 = vpow2.f32 %v1432_v32 }
 0x26d   :  { %v1478_v38 = vpop.eup %1477 }
 0x26e   :  { %v1480_v59 = vpop.eup %1479  ;;  %v727_v47 = vadd.f32 1.0, %v1478_v38 }
 0x26f   :  { %v747_v26 = vadd.f32 1.0, %v1480_v59 }
 0x270   :  { %1481 = vrcp.f32 %v727_v47  ;;  %v739_v56 = vand.u32 2147483648, %v727_v47  ;;  %v737_v31 = vand.u32 2147483647, %v727_v47  ;;  %vm733_vm2 = vweird.f32 %v727_v47 }
 0x271   :  { %1483 = vrcp.f32 %v747_v26  ;;  %v759_v18 = vand.u32 2147483648, %v747_v26  ;;  %vm753_vm6 = vweird.f32 %v747_v26  ;;  %v757_v20 = vand.u32 2147483647, %v747_v26 }
 0x272   :  { %v740_v27 = vor.u32 1.1754944e-38, %v739_v56  ;;  %vm738_vm4 = vcmp.eq.f32.partialorder %v737_v31, 8.507059e+37  ;;  %v2487_v56 = vld [vmem:[#allocation4 + $0xe8] sm:$0xff] }
 0x273   :  { %v760_v30 = vor.u32 1.1754944e-38, %v759_v18  ;;  %vm758_vm8 = vcmp.eq.f32.partialorder %v757_v20, 8.507059e+37  ;;  %v2498_v31 = vld [vmem:[#allocation4 + $0xc8] sm:$0xff]  ;;  %v2533_v18 = vld [vmem:[#allocation4 + $0x50] sm:$0xff]  ;;  %v2536_v20 = vld [vmem:[#allocation4 + $0x40] sm:$0xff] }
 0x276   :  { %v1482_v7 = vpop.eup %1481 }
 0x277   :  { %v1484_v50 = vpop.eup %1483  ;;  %v729_v19 = vmul.f32 %v1482_v7, %v727_v47  ;;  %vm734_vm1 = vweird.f32 %v1482_v7 }
 0x278   :  { %v749_v25 = vmul.f32 %v1484_v50, %v747_v26  ;;  %vm735_vm3 = vmor %vm733_vm2, %vm734_vm1  ;;  %vm754_vm5 = vweird.f32 %v1484_v50  ;;  %v2470_v26 = vld [vmem:[#allocation4 + $0x130] sm:$0xff] }
 0x279   :  { %v730_v39 = vsub.f32 1.0, %v729_v19  ;;  %vm755_vm7 = vmor %vm753_vm6, %vm754_vm5 }
 0x27a   :  { %v750_v6 = vsub.f32 1.0, %v749_v25  ;;  %v2480_v25 = vld [vmem:[#allocation4 + $0x100] sm:$0xff] }
 0x27b   :  { %v731_v12 = vmul.f32 %v1482_v7, %v730_v39  ;;  %v2484_v39 = vld [vmem:[#allocation4 + $0xf8] sm:$0xff] }
 0x27c   :  { %v751_v53 = vmul.f32 %v1484_v50, %v750_v6  ;;  %v2491_v6 = vld [vmem:[#allocation4 + $0xe0] sm:$0xff] }
 0x27d   :  { %v732_v33 = vadd.f32 %v1482_v7, %v731_v12  ;;  %v2494_v12 = vld [vmem:[#allocation4 + $0xd0] sm:$0xff] }
 0x27e   :  { %v752_v41 = vadd.f32 %v1484_v50, %v751_v53  ;;  %v2505_v53 = vld [vmem:[#allocation4 + $0xb0] sm:$0xff] }
 0x27f   :  { %v736_v3 = vsel %vm735_vm3, %v1482_v7, %v732_v33  ;;  %v2508_v33 = vld [vmem:[#allocation4 + $0xa0] sm:$0xff] }
 0x280   :  { %v741_v43 = vsel %vm738_vm4, %v740_v27, %v736_v3  ;;  %v756_v21 = vsel %vm755_vm7, %v1484_v50, %v752_v41  ;;  %v2475_v50 = vld [vmem:[#allocation4 + $0x118] sm:$0xff]  ;;  %v2519_v3 = vld [vmem:[#allocation4 + $0x80] sm:$0xff]  ;;  %v2526_v41 = vld [vmem:[#allocation4 + $0x68] sm:$0xff] }
 0x281   :  { %v764_v16 = vmul.f32 %v763_v5, %v741_v43  ;;  %v761_v32 = vsel %vm758_vm8, %v760_v30, %v756_v21  ;;  %v2512_v27 = vld [vmem:[#allocation4 + $0x98] sm:$0xff]  ;;  %v2515_v5 = vld [vmem:[#allocation4 + $0x88] sm:$0xff]  ;;  %v2522_v43 = vld [vmem:[#allocation4 + $0x70] sm:$0xff] }
 0x282   :  { %v767_v38 = vsub.f32 1.0, %v761_v32  ;;  %v769_v7 = vmul.f32 %v761_v32, %v2350_v13  ;;  %v2543_v21 = vld [vmem:[#allocation4 + $0x28] sm:$0xff]  ;;  %v2547_v30 = vld [vmem:[#allocation4 + $0x20] sm:$0xff]  ;;  %v2550_v32 = vld [vmem:[#allocation4 + $0x10] sm:$0xff] }
 0x283   :  { %v765_v28 = vadd.f32 %v764_v16, %v2266_v54  ;;  %v2465_v54 = vld [vmem:[#allocation4 + $0x148] sm:$0xff]  ;;  %v2529_v16 = vld [vmem:[#allocation4 + $0x58] sm:$0xff]  ;;  %2850 = vst [vmem:[#allocation19_spill] sm:$0xff] %v2543_v21 }
 0x284   :  { %2851 = vst [vmem:[#allocation21_spill] sm:$0xff] %v2547_v30 }
 0x285   :  { %1485 = vtanh.f32 %v765_v28  ;;  %v2540_v28 = vld [vmem:[#allocation4 + $0x38] sm:$0xff]  ;;  %2852 = vst [vmem:[#allocation10_spill] sm:$0xff] %v2550_v32 }
 0x286   :  { %2849 = vst [vmem:[#allocation9_spill] sm:$0xff] %v2540_v28 }
 0x28b   :  { %v1486_v59 = vpop.eup %1485 }
 0x28c   :  { %v768_v47 = vmul.f32 %v1486_v59, %v767_v38  ;;  %v2554_v38 = vld [vmem:[#allocation4 + $0x8] sm:$0xff] }
 0x28d   :  { %2853 = vst [vmem:[#allocation20_spill] sm:$0xff] %v2554_v38 }
 0x28e   :  { %v2454_v19 = vadd.f32 %v769_v7, %v768_v47  ;;  %v2854_v47 = vld [vmem:[#allocation33_spill] sm:$0xff] }
 0x290   :  { %787 = vmatmul.f32.vlgmr.msrb.gmra.mxu1 %v2454_v19  ;;  %807 = vmatmul.f32.vlgmr.msra.gmra.mxu2 %v2454_v19 }
 0x291   :  { %827 = vmatmul.f32.vlgmr.msra.gmra.mxu3 %v2454_v19  ;;  %1027 = vmatpush.msrb.mxu1 %v2355_v4 }
 0x292   :  { %1095 = vmatpush.msra.mxu2 %v2358_v0  ;;  %1115 = vmatpush.msra.mxu3 %v2361_v58 }
 0x293   :  { %1028 = vmatpush.msrb.mxu1 %v2364_v1 }
 0x294   :  { %1096 = vmatpush.msra.mxu2 %v2367_v17  ;;  %1116 = vmatpush.msra.mxu3 %v2370_v22 }
 0x295   :  { %1029 = vmatpush.msrb.mxu1 %v2465_v54 }
 0x296   :  { %1097 = vmatpush.msra.mxu2 %v2374_v29  ;;  %1117 = vmatpush.msra.mxu3 %v2377_v36 }
 0x297   :  { %1030 = vmatpush.msrb.mxu1 %v2470_v26 }
 0x298   :  { %1098 = vmatpush.msra.mxu2 %v2381_v23  ;;  %1118 = vmatpush.msra.mxu3 %v2384_v62 }
 0x299   :  { %1031 = vmatpush.msrb.mxu1 %v2475_v50 }
 0x29a   :  { %1099 = vmatpush.msra.mxu2 %v2388_v37  ;;  %1119 = vmatpush.msra.mxu3 %v2391_v63 }
 0x29b   :  { %1032 = vmatpush.msrb.mxu1 %v2480_v25 }
 0x29c   :  { %1100 = vmatpush.msra.mxu2 %v2395_v40  ;;  %1120 = vmatpush.msra.mxu3 %v2484_v39 }
 0x29d   :  { %1033 = vmatpush.msrb.mxu1 %v2487_v56 }
 0x29e   :  { %1101 = vmatpush.msra.mxu2 %v2400_v35  ;;  %1121 = vmatpush.msra.mxu3 %v2491_v6 }
 0x29f   :  { %1034 = vmatpush.msrb.mxu1 %v2494_v12 }
 0x2a0   :  { %1102 = vmatpush.msra.mxu2 %v2405_v42  ;;  %1122 = vmatpush.msra.mxu3 %v2498_v31 }
 0x2a1   :  { %1035 = vmatpush.msrb.mxu1 %v2501_v15 }
 0x2a2   :  { %1103 = vmatpush.msra.mxu2 %v2410_v46  ;;  %1123 = vmatpush.msra.mxu3 %v2505_v53 }
 0x2a3   :  { %1036 = vmatpush.msrb.mxu1 %v2508_v33 }
 0x2a4   :  { %1104 = vmatpush.msra.mxu2 %v2415_v44  ;;  %1124 = vmatpush.msra.mxu3 %v2512_v27 }
 0x2a5   :  { %1037 = vmatpush.msrb.mxu1 %v2515_v5 }
 0x2a6   :  { %1105 = vmatpush.msra.mxu2 %v2420_v45  ;;  %1125 = vmatpush.msra.mxu3 %v2519_v3 }
 0x2a7   :  { %1038 = vmatpush.msrb.mxu1 %v2522_v43 }
 0x2a8   :  { %1106 = vmatpush.msra.mxu2 %v2425_v48  ;;  %1126 = vmatpush.msra.mxu3 %v2526_v41 }
 0x2a9   :  { %1039 = vmatpush.msrb.mxu1 %v2529_v16 }
 0x2aa   :  { %1107 = vmatpush.msra.mxu2 %v2430_v49  ;;  %1127 = vmatpush.msra.mxu3 %v2533_v18 }
 0x2ab   :  { %1040 = vmatpush.msrb.mxu1 %v2536_v20 }
 0x2ac   :  { %1108 = vmatpush.msra.mxu2 %v2435_v51  ;;  %1128 = vmatpush.msra.mxu3 %v2540_v28 }
 0x2ad   :  { %1041 = vmatpush.msrb.mxu1 %v2543_v21 }
 0x2ae   :  { %1109 = vmatpush.msra.mxu2 %v2440_v11  ;;  %1129 = vmatpush.msra.mxu3 %v2547_v30 }
 0x2af   :  { %1042 = vmatpush.msrb.mxu1 %v2550_v32 }
 0x2b0   :  { %1110 = vmatpush.msra.mxu2 %v2445_v14  ;;  %1130 = vmatpush.msra.mxu3 %v2554_v38 }
 0x30d   :  { %v788_v59 = vpop.f32.mrf.mxu1 }
 0x30e   :  { %v831_v7 = vadd.f32 %v788_v59, %v2854_v47 }
 0x310   :  { %v1433_v61 = vmul.f32 -1.442695, %v831_v7 }
 0x312   :  { %1487 = vpow2.f32 %v1433_v61 }
 0x313   :  { %v808_v13 = vpop.f32.mrf.mxu2 }
 0x314   :  { %v851_v2 = vadd.f32 %v808_v13, %v2261_v34  ;;  %v828_v61 = vpop.f32.mrf.mxu3 }
 0x316   :  { %v1434_v9 = vmul.f32 -1.442695, %v851_v2 }
 0x318   :  { %v1488_v24 = vpop.eup %1487  ;;  %1489 = vpow2.f32 %v1434_v9 }
 0x319   :  { %v835_v10 = vadd.f32 1.0, %v1488_v24 }
 0x31b   :  { %1491 = vrcp.f32 %v835_v10  ;;  %v847_v38 = vand.u32 2147483648, %v835_v10  ;;  %v845_v59 = vand.u32 2147483647, %v835_v10  ;;  %vm841_vm10 = vweird.f32 %v835_v10 }
 0x31d   :  { %v848_v2 = vor.u32 1.1754944e-38, %v847_v38  ;;  %vm846_vm12 = vcmp.eq.f32.partialorder %v845_v59, 8.507059e+37 }
 0x31e   :  { %v1490_v60 = vpop.eup %1489 }
 0x31f   :  { %v855_v52 = vadd.f32 1.0, %v1490_v60  ;;  %v871_v60 = vadd.f32 %v2276_v55, %v828_v61 }
 0x321   :  { %v1492_v57 = vpop.eup %1491  ;;  %1493 = vrcp.f32 %v855_v52  ;;  %vm861_vm14 = vweird.f32 %v855_v52 }
 0x322   :  { %v837_v14 = vmul.f32 %v1492_v57, %v835_v10  ;;  %vm842_vm9 = vweird.f32 %v1492_v57 }
 0x323   :  { %vm843_vm11 = vmor %vm841_vm10, %vm842_vm9 }
 0x324   :  { %v838_v32 = vsub.f32 1.0, %v837_v14  ;;  %v867_v14 = vand.u32 2147483648, %v855_v52 }
 0x326   :  { %v839_v30 = vmul.f32 %v1492_v57, %v838_v32  ;;  %v865_v32 = vand.u32 2147483647, %v855_v52 }
 0x327   :  { %v1494_v47 = vpop.eup %1493 }
 0x328   :  { %v857_v7 = vmul.f32 %v1494_v47, %v855_v52  ;;  %v840_v11 = vadd.f32 %v1492_v57, %v839_v30  ;;  %vm862_vm13 = vweird.f32 %v1494_v47  ;;  %v868_v30 = vor.u32 1.1754944e-38, %v867_v14  ;;  %v2855_v52 = vld [vmem:[#allocation8_spill] sm:$0xff] }
 0x329   :  { %vm863_vm15 = vmor %vm861_vm14, %vm862_vm13  ;;  %vm866_vm0 = vcmp.eq.f32.partialorder %v865_v32, 8.507059e+37 }
 0x32a   :  { %v858_v9 = vsub.f32 1.0, %v857_v7  ;;  %v844_v34 = vsel %vm843_vm11, %v1492_v57, %v840_v11 }
 0x32b   :  { %v849_v24 = vsel %vm846_vm12, %v848_v2, %v844_v34 }
 0x32c   :  { %v859_v13 = vmul.f32 %v1494_v47, %v858_v9  ;;  %v872_v21 = vmul.f32 %v871_v60, %v849_v24 }
 0x32e   :  { %v860_v28 = vadd.f32 %v1494_v47, %v859_v13  ;;  %v873_v51 = vadd.f32 %v872_v21, %v2258_v8  ;;  %v2856_v8 = vld [vmem:[#allocation9_spill] sm:$0xff] }
 0x330   :  { %v864_v10 = vsel %vm863_vm15, %v1494_v47, %v860_v28  ;;  %1495 = vtanh.f32 %v873_v51 }
 0x331   :  { %v869_v38 = vsel %vm866_vm0, %v868_v30, %v864_v10  ;;  %v2865_v30 = vld [vmem:[#allocation45_spill] sm:$0xff] }
 0x332   :  { %v875_v57 = vsub.f32 1.0, %v869_v38  ;;  %v877_v61 = vmul.f32 %v869_v38, %v2454_v19 }
 0x336   :  { %v1496_v11 = vpop.eup %1495 }
 0x337   :  { %v876_v59 = vmul.f32 %v1496_v11, %v875_v57 }
 0x339   :  { %v2562_v7 = vadd.f32 %v877_v61, %v876_v59 }
 0x33b   :  { %1339 = vrot.lane.b32.xlu2 %v2562_v7, %s1642_s27  ;;  %895 = vmatmul.f32.vlgmr.msra.gmra.mxu0 %v2562_v7 }
 0x33c   :  { %915 = vmatmul.f32.vlgmr.msra.gmra.mxu1 %v2562_v7  ;;  %935 = vmatmul.f32.vlgmr.msrb.gmra.mxu2 %v2562_v7 }
 0x33d   :  { %1135 = vmatpush.msra.mxu0 %v2355_v4  ;;  %1203 = vmatpush.msra.mxu1 %v2358_v0  ;;  %v2857_v0 = vld [vmem:[#allocation19_spill] sm:$0xff] }
 0x33e   :  { %1223 = vmatpush.msrb.mxu2 %v2361_v58  ;;  %v2858_v58 = vld [vmem:[#allocation16_spill] sm:$0xff] }
 0x33f   :  { %1136 = vmatpush.msra.mxu0 %v2364_v1  ;;  %1204 = vmatpush.msra.mxu1 %v2367_v17  ;;  %v2859_v17 = vld [vmem:[#allocation21_spill] sm:$0xff] }
 0x340   :  { %1224 = vmatpush.msrb.mxu2 %v2370_v22  ;;  %v2860_v22 = vld [vmem:[#allocation10_spill] sm:$0xff] }
 0x341   :  { %1137 = vmatpush.msra.mxu0 %v2465_v54  ;;  %1205 = vmatpush.msra.mxu1 %v2374_v29  ;;  %v2861_v29 = vld [vmem:[#allocation18_spill] sm:$0xff] }
 0x342   :  { %1225 = vmatpush.msrb.mxu2 %v2377_v36  ;;  %v2862_v36 = vld [vmem:[#allocation20_spill] sm:$0xff] }
 0x343   :  { %1346 = vrot.lane.b32.xlu2 %v2454_v19, %s1642_s27  ;;  %1138 = vmatpush.msra.mxu0 %v2470_v26 }
 0x344   :  { %1206 = vmatpush.msra.mxu1 %v2381_v23  ;;  %1226 = vmatpush.msrb.mxu2 %v2384_v62  ;;  %v2863_v62 = vld [vmem:[#allocation32_spill] sm:$0xff] }
 0x345   :  { %1139 = vmatpush.msra.mxu0 %v2475_v50 }
 0x346   :  { %1207 = vmatpush.msra.mxu1 %v2388_v37  ;;  %1227 = vmatpush.msrb.mxu2 %v2391_v63 }
 0x347   :  { %1140 = vmatpush.msra.mxu0 %v2480_v25 }
 0x348   :  { %1208 = vmatpush.msra.mxu1 %v2395_v40  ;;  %1228 = vmatpush.msrb.mxu2 %v2484_v39  ;;  %v2864_v40 = vld [vmem:[#allocation46_spill] sm:$0xff] }
 0x349   :  { %1141 = vmatpush.msra.mxu0 %v2487_v56 }
 0x34a   :  { %1209 = vmatpush.msra.mxu1 %v2400_v35  ;;  %1229 = vmatpush.msrb.mxu2 %v2491_v6 }
 0x34b   :  { %1142 = vmatpush.msra.mxu0 %v2494_v12 }
 0x34c   :  { %1210 = vmatpush.msra.mxu1 %v2405_v42  ;;  %1230 = vmatpush.msrb.mxu2 %v2498_v31 }
 0x34d   :  { %1143 = vmatpush.msra.mxu0 %v2501_v15 }
 0x34e   :  { %1211 = vmatpush.msra.mxu1 %v2410_v46  ;;  %1231 = vmatpush.msrb.mxu2 %v2505_v53 }
 0x34f   :  { %1144 = vmatpush.msra.mxu0 %v2508_v33 }
 0x350   :  { %1212 = vmatpush.msra.mxu1 %v2415_v44  ;;  %1232 = vmatpush.msrb.mxu2 %v2512_v27 }
 0x351   :  { %1145 = vmatpush.msra.mxu0 %v2515_v5 }
 0x352   :  { %1213 = vmatpush.msra.mxu1 %v2420_v45  ;;  %1233 = vmatpush.msrb.mxu2 %v2519_v3 }
 0x353   :  { %1146 = vmatpush.msra.mxu0 %v2522_v43 }
 0x354   :  { %1214 = vmatpush.msra.mxu1 %v2425_v48  ;;  %1234 = vmatpush.msrb.mxu2 %v2526_v41 }
 0x355   :  { %1147 = vmatpush.msra.mxu0 %v2529_v16 }
 0x356   :  { %1215 = vmatpush.msra.mxu1 %v2430_v49  ;;  %1235 = vmatpush.msrb.mxu2 %v2533_v18 }
 0x357   :  { %1148 = vmatpush.msra.mxu0 %v2536_v20 }
 0x358   :  { %1216 = vmatpush.msra.mxu1 %v2855_v52  ;;  %1236 = vmatpush.msrb.mxu2 %v2856_v8 }
 0x359   :  { %1149 = vmatpush.msra.mxu0 %v2857_v0 }
 0x35a   :  { %1217 = vmatpush.msra.mxu1 %v2858_v58  ;;  %1237 = vmatpush.msrb.mxu2 %v2859_v17 }
 0x35b   :  { %1150 = vmatpush.msra.mxu0 %v2860_v22 }
 0x35c   :  { %1218 = vmatpush.msra.mxu1 %v2861_v29  ;;  %1238 = vmatpush.msrb.mxu2 %v2862_v36 }
 0x395   :  { %v1340_v58 = vpop.permute.xlu2 %1339 }
 0x3b8   :  { %v896_v23 = vpop.f32.mrf.mxu0 }
 0x3b9   :  { %v939_v37 = vadd.f32 %v896_v23, %v2863_v62  ;;  %v916_v63 = vpop.f32.mrf.mxu1 }
 0x3ba   :  { %v959_v35 = vadd.f32 %v916_v63, %v2864_v40 }
 0x3bb   :  { %v1435_v42 = vmul.f32 -1.442695, %v939_v37 }
 0x3bc   :  { %v1436_v46 = vmul.f32 -1.442695, %v959_v35 }
 0x3bd   :  { %1497 = vpow2.f32 %v1435_v42 }
 0x3be   :  { %1499 = vpow2.f32 %v1436_v46 }
 0x3bf   :  { %v936_v21 = vpop.f32.mrf.mxu2 }
 0x3c0   :  { %v979_v34 = vadd.f32 %v2276_v55, %v936_v21 }
 0x3c3   :  { %v1498_v44 = vpop.eup %1497 }
 0x3c4   :  { %v1500_v45 = vpop.eup %1499  ;;  %v943_v48 = vadd.f32 1.0, %v1498_v44  ;;  %v2660_v44 = vld [vmem:[%s2722_s7] ss:$0 sm:$0xff] }
 0x3c5   :  { %v963_v49 = vadd.f32 1.0, %v1500_v45 }
 0x3c6   :  { %1501 = vrcp.f32 %v943_v48  ;;  %v955_v3 = vand.u32 2147483648, %v943_v48  ;;  %v953_v18 = vand.u32 2147483647, %v943_v48  ;;  %vm949_vm2 = vweird.f32 %v943_v48 }
 0x3c7   :  { %1503 = vrcp.f32 %v963_v49  ;;  %v975_v13 = vand.u32 2147483648, %v963_v49  ;;  %vm969_vm6 = vweird.f32 %v963_v49  ;;  %v973_v32 = vand.u32 2147483647, %v963_v49 }
 0x3c8   :  { %v956_v2 = vor.u32 1.1754944e-38, %v955_v3  ;;  %vm954_vm4 = vcmp.eq.f32.partialorder %v953_v18, 8.507059e+37 }
 0x3c9   :  { %v976_v57 = vor.u32 1.1754944e-38, %v975_v13  ;;  %vm974_vm8 = vcmp.eq.f32.partialorder %v973_v32, 8.507059e+37 }
 0x3cc   :  { %v1502_v51 = vpop.eup %1501 }
 0x3cd   :  { %v1504_v39 = vpop.eup %1503  ;;  %v945_v6 = vmul.f32 %v1502_v51, %v943_v48  ;;  %vm950_vm1 = vweird.f32 %v1502_v51 }
 0x3ce   :  { %v965_v31 = vmul.f32 %v1504_v39, %v963_v49  ;;  %vm951_vm3 = vmor %vm949_vm2, %vm950_vm1  ;;  %vm970_vm5 = vweird.f32 %v1504_v39 }
 0x3cf   :  { %v946_v53 = vsub.f32 1.0, %v945_v6  ;;  %vm971_vm7 = vmor %vm969_vm6, %vm970_vm5 }
 0x3d0   :  { %v966_v27 = vsub.f32 1.0, %v965_v31 }
 0x3d1   :  { %v947_v41 = vmul.f32 %v1502_v51, %v946_v53  ;;  %v2868_v53 = vld [vmem:[#allocation43_spill] sm:$0xff] }
 0x3d2   :  { %v967_v28 = vmul.f32 %v1504_v39, %v966_v27 }
 0x3d3   :  { %v948_v47 = vadd.f32 %v1502_v51, %v947_v41 }
 0x3d4   :  { %v968_v60 = vadd.f32 %v1504_v39, %v967_v28 }
 0x3d5   :  { %v952_v9 = vsel %vm951_vm3, %v1502_v51, %v948_v47 }
 0x3d6   :  { %v957_v24 = vsel %vm954_vm4, %v956_v2, %v952_v9  ;;  %v972_v38 = vsel %vm971_vm7, %v1504_v39, %v968_v60 }
 0x3d7   :  { %v980_v14 = vmul.f32 %v979_v34, %v957_v24  ;;  %v977_v11 = vsel %vm974_vm8, %v976_v57, %v972_v38  ;;  %v1347_v34 = vpop.permute.xlu2 %1346  ;;  %v2869_v24 = vld [vmem:[#allocation47_spill] sm:$0xff]  ;;  %v2871_v57 = vld [vmem:[#allocation42_spill] sm:$0xff] }
 0x3d8   :  { %v983_v59 = vsub.f32 1.0, %v977_v11  ;;  %v985_v55 = vmul.f32 %v977_v11, %v2562_v7 }
 0x3d9   :  { %v981_v10 = vadd.f32 %v980_v14, %v2865_v30  ;;  %v2870_v30 = vld [vmem:[#allocation36_spill] sm:$0xff] }
 0x3db   :  { %1505 = vtanh.f32 %v981_v10 }
 0x3e1   :  { %v1506_v61 = vpop.eup %1505 }
 0x3e2   :  { %v984_v52 = vmul.f32 %v1506_v61, %v983_v59 }
 0x3e4   :  { %v2624_v8 = vadd.f32 %v985_v55, %v984_v52 }
 0x3e6   :  { %v1342_v17 = vadd.f32 %v1340_v58, %v2624_v8  ;;  %1332 = vrot.lane.b32.xlu1 %v2624_v8, %s1642_s27  ;;  %1003 = vmatmul.f32.vlgmr.msrb.gmra.mxu3 %v2624_v8 }
 0x3e7   :  { %1023 = vmatmul.f32.vlgmr.msrb.gmra.mxu0 %v2624_v8  ;;  %1043 = vmatmul.f32.vlgmr.msrb.gmra.mxu1 %v2624_v8 }
 0x3e8   :  { %1446 = vst [vmem:[%s2723_s8 + $0x20] sm:$0xff] %v1342_v17  ;;  %1243 = vmatpush.msrb.mxu3 %v2355_v4 }
 0x3ea   :  { %1244 = vmatpush.msrb.mxu3 %v2364_v1 }
 0x3ec   :  { %1245 = vmatpush.msrb.mxu3 %v2465_v54 }
 0x3ee   :  { %1246 = vmatpush.msrb.mxu3 %v2470_v26  ;;  %v2866_v26 = vld [vmem:[#allocation44_spill] sm:$0xff] }
 0x3f0   :  { %1247 = vmatpush.msrb.mxu3 %v2475_v50 }
 0x3f2   :  { %1248 = vmatpush.msrb.mxu3 %v2480_v25 }
 0x3f4   :  { %1249 = vmatpush.msrb.mxu3 %v2487_v56 }
 0x3f6   :  { %1250 = vmatpush.msrb.mxu3 %v2494_v12  ;;  %v2867_v12 = vld [vmem:[#allocation34_spill] sm:$0xff] }
 0x3f8   :  { %1251 = vmatpush.msrb.mxu3 %v2501_v15 }
 0x3fa   :  { %1252 = vmatpush.msrb.mxu3 %v2508_v33 }
 0x3fc   :  { %1253 = vmatpush.msrb.mxu3 %v2515_v5 }
 0x3fe   :  { %1254 = vmatpush.msrb.mxu3 %v2522_v43 }
 0x400   :  { %1255 = vmatpush.msrb.mxu3 %v2529_v16 }
 0x402   :  { %1256 = vmatpush.msrb.mxu3 %v2536_v20 }
 0x404   :  { %1257 = vmatpush.msrb.mxu3 %v2857_v0 }
 0x406   :  { %1258 = vmatpush.msrb.mxu3 %v2860_v22 }
 0x458   :  { %v1333_v4 = vpop.permute.xlu1 %1332 }
 0x459   :  { %v1335_v1 = vadd.f32 %v1333_v4, %v2562_v7 }
 0x45b   :  { %1445 = vst [vmem:[%s2723_s8 + $0x18] sm:$0xff] %v1335_v1 }
 0x464   :  { %v1024_v54 = vpop.f32.mrf.mxu0  ;;  %v1044_v35 = vpop.f32.mrf.mxu1 }
 0x465   :  { %v1067_v50 = vadd.f32 %v1024_v54, %v2866_v26  ;;  %v1087_v45 = vadd.f32 %v2660_v44, %v1044_v35 }
 0x467   :  { %v1438_v25 = vmul.f32 -1.442695, %v1067_v50 }
 0x469   :  { %1507 = vpow2.f32 %v1438_v25  ;;  %v1004_v56 = vpop.f32.mrf.mxu3 }
 0x46a   :  { %v1047_v15 = vadd.f32 %v1004_v56, %v2867_v12 }
 0x46c   :  { %v1437_v33 = vmul.f32 -1.442695, %v1047_v15 }
 0x46e   :  { %1509 = vpow2.f32 %v1437_v33 }
 0x46f   :  { %v1508_v5 = vpop.eup %1507 }
 0x470   :  { %v1071_v43 = vadd.f32 1.0, %v1508_v5 }
 0x472   :  { %1511 = vrcp.f32 %v1071_v43  ;;  %v1083_v39 = vand.u32 2147483648, %v1071_v43  ;;  %vm1077_vm14 = vweird.f32 %v1071_v43  ;;  %v1081_v31 = vand.u32 2147483647, %v1071_v43 }
 0x474   :  { %v1510_v16 = vpop.eup %1509  ;;  %v1084_v41 = vor.u32 1.1754944e-38, %v1083_v39  ;;  %vm1082_vm0 = vcmp.eq.f32.partialorder %v1081_v31, 8.507059e+37 }
 0x475   :  { %v1051_v20 = vadd.f32 1.0, %v1510_v16 }
 0x477   :  { %1513 = vrcp.f32 %v1051_v20  ;;  %v1063_v62 = vand.u32 2147483648, %v1051_v20  ;;  %v1061_v63 = vand.u32 2147483647, %v1051_v20  ;;  %vm1057_vm10 = vweird.f32 %v1051_v20 }
 0x478   :  { %v1512_v7 = vpop.eup %1511 }
 0x479   :  { %v1073_v0 = vmul.f32 %v1512_v7, %v1071_v43  ;;  %v1064_v46 = vor.u32 1.1754944e-38, %v1063_v62  ;;  %vm1062_vm12 = vcmp.eq.f32.partialorder %v1061_v63, 8.507059e+37  ;;  %vm1078_vm13 = vweird.f32 %v1512_v7 }
 0x47a   :  { %vm1079_vm15 = vmor %vm1077_vm14, %vm1078_vm13 }
 0x47b   :  { %v1074_v36 = vsub.f32 1.0, %v1073_v0 }
 0x47d   :  { %v1514_v22 = vpop.eup %1513  ;;  %v1075_v40 = vmul.f32 %v1512_v7, %v1074_v36  ;;  %v2872_v36 = vld [vmem:[#allocation41_spill] sm:$0xff] }
 0x47e   :  { %v1053_v29 = vmul.f32 %v1514_v22, %v1051_v20  ;;  %vm1058_vm9 = vweird.f32 %v1514_v22 }
 0x47f   :  { %vm1059_vm11 = vmor %vm1057_vm10, %vm1058_vm9  ;;  %v1076_v49 = vadd.f32 %v1512_v7, %v1075_v40 }
 0x480   :  { %v1054_v23 = vsub.f32 1.0, %v1053_v29 }
 0x481   :  { %v1080_v3 = vsel %vm1079_vm15, %v1512_v7, %v1076_v49  ;;  %v2873_v49 = vld [vmem:[#allocation17_spill] sm:$0xff] }
 0x482   :  { %v1055_v37 = vmul.f32 %v1514_v22, %v1054_v23  ;;  %v1085_v18 = vsel %vm1082_vm0, %v1084_v41, %v1080_v3  ;;  %v2875_v3 = vld [vmem:[#allocation40_spill] sm:$0xff] }
 0x483   :  { %v1091_v28 = vsub.f32 1.0, %v1085_v18  ;;  %v1093_v2 = vmul.f32 %v1085_v18, %v2624_v8 }
 0x484   :  { %v1056_v42 = vadd.f32 %v1514_v22, %v1055_v37 }
 0x486   :  { %v1060_v48 = vsel %vm1059_vm11, %v1514_v22, %v1056_v42 }
 0x487   :  { %v1065_v51 = vsel %vm1062_vm12, %v1064_v46, %v1060_v48 }
 0x488   :  { %v1088_v6 = vmul.f32 %v1087_v45, %v1065_v51 }
 0x48a   :  { %v1089_v27 = vadd.f32 %v1088_v6, %v2868_v53  ;;  %v2874_v6 = vld [vmem:[#allocation38_spill] sm:$0xff] }
 0x48c   :  { %1515 = vtanh.f32 %v1089_v27 }
 0x492   :  { %v1516_v21 = vpop.eup %1515 }
 0x493   :  { %v1092_v47 = vmul.f32 %v1516_v21, %v1091_v28 }
 0x495   :  { %v1094_v9 = vadd.f32 %v1093_v2, %v1092_v47 }
 0x497   :  { %1325 = vrot.lane.b32.xlu1 %v1094_v9, %s1642_s27  ;;  %v1349_v60 = vadd.f32 %v1347_v34, %v1094_v9  ;;  %1111 = vmatmul.f32.vlgmr.msra.gmra.mxu2 %v1094_v9 }
 0x498   :  { %1131 = vmatmul.f32.vlgmr.msra.gmra.mxu3 %v1094_v9  ;;  %1151 = vmatmul.f32.vlgmr.msra.gmra.mxu0 %v1094_v9 }
 0x499   :  { %1447 = vst [vmem:[%s2723_s8 + $0x28] sm:$0xff] %v1349_v60 }
 0x49f   :  { %1360 = vrot.lane.b32.xlu1 %v2869_v24, %s1642_s27 }
 0x509   :  { %v1326_v13 = vpop.permute.xlu1 %1325 }
 0x50a   :  { %v1328_v14 = vadd.f32 %v1326_v13, %v2454_v19 }
 0x50c   :  { %1444 = vst [vmem:[%s2723_s8 + $0x10] sm:$0xff] %v1328_v14 }
 0x515   :  { %v1152_v12 = vpop.f32.mrf.mxu0 }
 0x516   :  { %v1195_v43 = vadd.f32 %v2660_v44, %v1152_v12 }
 0x51a   :  { %v1112_v32 = vpop.f32.mrf.mxu2 }
 0x51b   :  { %v1155_v10 = vadd.f32 %v1112_v32, %v2870_v30  ;;  %v1132_v38 = vpop.f32.mrf.mxu3 }
 0x51c   :  { %v1175_v11 = vadd.f32 %v1132_v38, %v2871_v57 }
 0x51d   :  { %v1439_v59 = vmul.f32 -1.442695, %v1155_v10 }
 0x51e   :  { %v1440_v61 = vmul.f32 -1.442695, %v1175_v11 }
 0x51f   :  { %1517 = vpow2.f32 %v1439_v59 }
 0x520   :  { %1519 = vpow2.f32 %v1440_v61 }
 0x525   :  { %v1518_v52 = vpop.eup %1517 }
 0x526   :  { %v1520_v55 = vpop.eup %1519  ;;  %v1159_v8 = vadd.f32 1.0, %v1518_v52 }
 0x527   :  { %v1179_v58 = vadd.f32 1.0, %v1520_v55 }
 0x528   :  { %1521 = vrcp.f32 %v1159_v8  ;;  %v1171_v26 = vand.u32 2147483648, %v1159_v8  ;;  %v1169_v56 = vand.u32 2147483647, %v1159_v8  ;;  %vm1165_vm2 = vweird.f32 %v1159_v8 }
 0x529   :  { %1523 = vrcp.f32 %v1179_v58  ;;  %v1191_v22 = vand.u32 2147483648, %v1179_v58  ;;  %vm1185_vm6 = vweird.f32 %v1179_v58  ;;  %v1189_v29 = vand.u32 2147483647, %v1179_v58 }
 0x52a   :  { %v1172_v5 = vor.u32 1.1754944e-38, %v1171_v26  ;;  %vm1170_vm4 = vcmp.eq.f32.partialorder %v1169_v56, 8.507059e+37 }
 0x52b   :  { %v1192_v37 = vor.u32 1.1754944e-38, %v1191_v22  ;;  %vm1190_vm8 = vcmp.eq.f32.partialorder %v1189_v29, 8.507059e+37 }
 0x52e   :  { %v1522_v19 = vpop.eup %1521 }
 0x52f   :  { %v1524_v17 = vpop.eup %1523  ;;  %v1161_v4 = vmul.f32 %v1522_v19, %v1159_v8  ;;  %vm1166_vm1 = vweird.f32 %v1522_v19 }
 0x530   :  { %v1181_v1 = vmul.f32 %v1524_v17, %v1179_v58  ;;  %vm1167_vm3 = vmor %vm1165_vm2, %vm1166_vm1  ;;  %vm1186_vm5 = vweird.f32 %v1524_v17 }
 0x531   :  { %v1162_v54 = vsub.f32 1.0, %v1161_v4  ;;  %vm1187_vm7 = vmor %vm1185_vm6, %vm1186_vm5  ;;  %v2876_v4 = vld [vmem:[#allocation39_spill] sm:$0xff] }
 0x532   :  { %v1182_v50 = vsub.f32 1.0, %v1181_v1 }
 0x533   :  { %v1163_v25 = vmul.f32 %v1522_v19, %v1162_v54 }
 0x534   :  { %v1183_v15 = vmul.f32 %v1524_v17, %v1182_v50 }
 0x535   :  { %v1164_v33 = vadd.f32 %v1522_v19, %v1163_v25 }
 0x536   :  { %v1184_v7 = vadd.f32 %v1524_v17, %v1183_v15 }
 0x537   :  { %v1168_v16 = vsel %vm1167_vm3, %v1522_v19, %v1164_v33 }
 0x538   :  { %v1173_v20 = vsel %vm1170_vm4, %v1172_v5, %v1168_v16  ;;  %v1188_v62 = vsel %vm1187_vm7, %v1524_v17, %v1184_v7  ;;  %v1361_v5 = vpop.permute.xlu1 %1360 }
 0x539   :  { %v1196_v0 = vmul.f32 %v1195_v43, %v1173_v20  ;;  %v1193_v63 = vsel %vm1190_vm8, %v1192_v37, %v1188_v62 }
 0x53a   :  { %v1199_v40 = vsub.f32 1.0, %v1193_v63  ;;  %v1201_v46 = vmul.f32 %v1193_v63, %v1094_v9 }
 0x53b   :  { %v1197_v23 = vadd.f32 %v1196_v0, %v2872_v36 }
 0x53d   :  { %1525 = vtanh.f32 %v1197_v23 }
 0x543   :  { %v1526_v35 = vpop.eup %1525 }
 0x544   :  { %v1200_v42 = vmul.f32 %v1526_v35, %v1199_v40 }
 0x546   :  { %v2679_v45 = vadd.f32 %v1201_v46, %v1200_v42 }
 0x548   :  { %1318 = vrot.lane.b32.xlu0 %v2679_v45, %s1642_s27  ;;  %1219 = vmatmul.f32.vlgmr.msra.gmra.mxu1 %v2679_v45 }
 0x549   :  { %1239 = vmatmul.f32.vlgmr.msrb.gmra.mxu2 %v2679_v45  ;;  %1259 = vmatmul.f32.vlgmr.msrb.gmra.mxu3 %v2679_v45 }
 0x5ba   :  { %v1319_v48 = vpop.permute.xlu0 %1318 }
 0x5bb   :  { %v1321_v51 = vadd.f32 %v1319_v48, %v2873_v49 }
 0x5bd   :  { %1443 = vst [vmem:[%s2723_s8 + $0x8] sm:$0xff] %v1321_v51 }
 0x5c5   :  { %v1220_v39 = vpop.f32.mrf.mxu1 }
 0x5c6   :  { %v1263_v31 = vadd.f32 %v1220_v39, %v2874_v6 }
 0x5c8   :  { %v1441_v53 = vmul.f32 -1.442695, %v1263_v31 }
 0x5ca   :  { %1527 = vpow2.f32 %v1441_v53 }
 0x5cc   :  { %v1240_v27 = vpop.f32.mrf.mxu2  ;;  %v1260_v30 = vpop.f32.mrf.mxu3 }
 0x5cd   :  { %v1283_v41 = vadd.f32 %v1240_v27, %v2875_v3  ;;  %v1303_v61 = vadd.f32 %v2660_v44, %v1260_v30 }
 0x5cf   :  { %v1442_v18 = vmul.f32 -1.442695, %v1283_v41 }
 0x5d0   :  { %v1528_v28 = vpop.eup %1527 }
 0x5d1   :  { %v1267_v21 = vadd.f32 1.0, %v1528_v28  ;;  %1529 = vpow2.f32 %v1442_v18 }
 0x5d3   :  { %1531 = vrcp.f32 %v1267_v21  ;;  %v1279_v13 = vand.u32 2147483648, %v1267_v21  ;;  %v1277_v32 = vand.u32 2147483647, %v1267_v21  ;;  %vm1273_vm10 = vweird.f32 %v1267_v21 }
 0x5d5   :  { %v1280_v11 = vor.u32 1.1754944e-38, %v1279_v13  ;;  %vm1278_vm12 = vcmp.eq.f32.partialorder %v1277_v32, 8.507059e+37 }
 0x5d7   :  { %v1530_v47 = vpop.eup %1529 }
 0x5d8   :  { %v1287_v2 = vadd.f32 1.0, %v1530_v47 }
 0x5d9   :  { %v1532_v9 = vpop.eup %1531 }
 0x5da   :  { %1533 = vrcp.f32 %v1287_v2  ;;  %v1269_v34 = vmul.f32 %v1532_v9, %v1267_v21  ;;  %vm1274_vm9 = vweird.f32 %v1532_v9  ;;  %v1299_v58 = vand.u32 2147483648, %v1287_v2 }
 0x5db   :  { %vm1275_vm11 = vmor %vm1273_vm10, %vm1274_vm9  ;;  %v1297_v17 = vand.u32 2147483647, %v1287_v2  ;;  %vm1293_vm14 = vweird.f32 %v1287_v2 }
 0x5dc   :  { %v1270_v60 = vsub.f32 1.0, %v1269_v34  ;;  %v1300_v26 = vor.u32 1.1754944e-38, %v1299_v58 }
 0x5dd   :  { %vm1298_vm0 = vcmp.eq.f32.partialorder %v1297_v17, 8.507059e+37 }
 0x5de   :  { %v1271_v14 = vmul.f32 %v1532_v9, %v1270_v60 }
 0x5e0   :  { %v1534_v10 = vpop.eup %1533  ;;  %v1272_v38 = vadd.f32 %v1532_v9, %v1271_v14 }
 0x5e1   :  { %v1289_v57 = vmul.f32 %v1534_v10, %v1287_v2  ;;  %vm1294_vm13 = vweird.f32 %v1534_v10 }
 0x5e2   :  { %v1276_v59 = vsel %vm1275_vm11, %v1532_v9, %v1272_v38  ;;  %vm1295_vm15 = vmor %vm1293_vm14, %vm1294_vm13 }
 0x5e3   :  { %v1290_v52 = vsub.f32 1.0, %v1289_v57  ;;  %v1281_v55 = vsel %vm1278_vm12, %v1280_v11, %v1276_v59 }
 0x5e4   :  { %v1304_v8 = vmul.f32 %v1303_v61, %v1281_v55 }
 0x5e5   :  { %v1291_v19 = vmul.f32 %v1534_v10, %v1290_v52 }
 0x5e6   :  { %v1305_v1 = vadd.f32 %v1304_v8, %v2876_v4 }
 0x5e7   :  { %v1292_v54 = vadd.f32 %v1534_v10, %v1291_v19 }
 0x5e8   :  { %1535 = vtanh.f32 %v1305_v1 }
 0x5e9   :  { %v1296_v50 = vsel %vm1295_vm15, %v1534_v10, %v1292_v54 }
 0x5ea   :  { %v1301_v25 = vsel %vm1298_vm0, %v1300_v26, %v1296_v50 }
 0x5eb   :  { %v1307_v56 = vsub.f32 1.0, %v1301_v25  ;;  %v1309_v15 = vmul.f32 %v1301_v25, %v2679_v45 }
 0x5ee   :  { %v1536_v12 = vpop.eup %1535 }
 0x5ef   :  { %v1308_v44 = vmul.f32 %v1536_v12, %v1307_v56 }
 0x5f1   :  { %v1310_v33 = vadd.f32 %v1309_v15, %v1308_v44 }
 0x5f3   :  { %1312 = vrot.lane.b32.xlu0 %v1310_v33, %s1642_s27  ;;  %v1363_v43 = vadd.f32 %v1361_v5, %v1310_v33  ;;  %1366 = vst [vmem:[%s2724_s9] sm:$0xff] %v1310_v33 }
 0x5f5   :  { %1449 = vst [vmem:[%s2723_s8 + $0x38] sm:$0xff] %v1363_v43 }
 0x5fb   :  { %1353 = vrot.lane.b32.xlu0 %v2873_v49, %s1642_s27 }
 0x665   :  { %v1313_v16 = vpop.permute.xlu0 %1312 }
 0x666   :  { %v1315_v20 = vadd.f32 %v1313_v16, %v2869_v24  ;;  %1450 = vst [vmem:[%s2724_s9 + $0x8] sm:$0xff] %v1313_v16 }
 0x668   :  { %1316 = vst [vmem:[%s2723_s8] sm:$0xff] %v1315_v20 }
 0x66d   :  { %v1354_v7 = vpop.permute.xlu0 %1353 }
 0x66e   :  { %v1356_v0 = vadd.f32 %v1354_v7, %v2679_v45 }
 0x670   :  { %1448 = vst [vmem:[%s2723_s8 + $0x30] sm:$0xff] %v1356_v0 }
 0x671   :  { %1377 = vsyncpa [#allocation3], 1 }
 0x672   :  { %1378 = vsyncpa [#allocation5], 1 }

</bundles_post_ra>
